<compile_context>
chip_gen: v7x
topology: tpu7x:2x2x1
jax: 0.10.0
libtpu: 0.0.40
codegen_flags: <defaults>
</compile_context>

<pallas_src>
import functools
import math

import jax
import jax.numpy as jnp
from jax.experimental import pallas as pl
from jax.experimental.pallas import tpu as pltpu


def _basic_block_kernel(*refs, stride, Ho, Wo, Cin, Cmid, Cout, has_proj,
                        lane_dense):
    """Fused BasicBlock forward for one batch element (all data in VMEM)."""
    if has_proj:
        (xph_ref, w1_ref, b1_ref, w2_ref, b2_ref, wsc_ref, bsc_ref,
         out_ref, h1p_ref) = refs
    else:
        (xph_ref, w1_ref, b1_ref, w2_ref, b2_ref, out_ref, h1p_ref) = refs

    # ---- conv1: 3x3, stride=`stride`, as 9 shifted bf16 MXU matmuls --------
    acc1 = jnp.zeros((Ho * Wo, Cmid), jnp.float32)
    sc_patch = None
    for dh in range(3):
        for dw in range(3):
            ph, oh = dh % stride, dh // stride
            pw, ow = dw % stride, dw // stride
            # Contiguous static slice of the phase-split padded input (f32).
            patch = xph_ref[ph * stride + pw, oh:oh + Ho, ow:ow + Wo, :]
            patch = patch.reshape(Ho * Wo, Cin)
            if dh == 1 and dw == 1:
                # Center tap samples exactly x[s*h, s*w, :] -> reused by the
                # shortcut (kept in f32 so the identity path stays exact).
                sc_patch = patch
            acc1 = acc1 + jnp.dot(patch.astype(jnp.bfloat16),
                                  w1_ref[dh * 3 + dw],
                                  preferred_element_type=jnp.float32)
    # BN1 scale is folded into w1; epilogue is bias + ReLU only.
    h1 = jnp.maximum(acc1 + b1_ref[...], 0.0)

    # ---- stage h1 with a 1-pixel zero halo; zero only the border strips ----
    zrow = jnp.zeros((1, Wo + 2, Cmid), jnp.float32)
    zcol = jnp.zeros((Ho, 1, Cmid), jnp.float32)
    h1p_ref[0:1, :, :] = zrow
    h1p_ref[Ho + 1:Ho + 2, :, :] = zrow
    h1p_ref[1:Ho + 1, 0:1, :] = zcol
    h1p_ref[1:Ho + 1, Wo + 1:Wo + 2, :] = zcol
    h1p_ref[1:Ho + 1, 1:Wo + 1, :] = h1.reshape(Ho, Wo, Cmid)

    # ---- conv2: 3x3, stride 1, + folded BN2 (bias only) --------------------
    acc2 = jnp.zeros((Ho * Wo, Cout), jnp.float32)
    for dh in range(3):
        for dw in range(3):
            patch = h1p_ref[dh:dh + Ho, dw:dw + Wo, :].reshape(Ho * Wo, Cmid)
            acc2 = acc2 + jnp.dot(patch.astype(jnp.bfloat16),
                                  w2_ref[dh * 3 + dw],
                                  preferred_element_type=jnp.float32)
    h2 = acc2 + b2_ref[...]

    # ---- shortcut: identity (exact f32) or 1x1 conv (stride s) + folded BN -
    if has_proj:
        sc = jnp.dot(sc_patch.astype(jnp.bfloat16), wsc_ref[...],
                     preferred_element_type=jnp.float32) + bsc_ref[...]
    else:
        sc = sc_patch  # stride == 1 and Cin == Cout

    # ---- residual add + ReLU, single store of the output block -------------
    out = jnp.maximum(h2 + sc, 0.0)
    if lane_dense:
        out_ref[...] = out.reshape(Ho, Wo * Cout).astype(out_ref.dtype)
    else:
        out_ref[...] = out.reshape(Ho, Wo, Cout).astype(out_ref.dtype)


def _fold_bn(gamma, beta, mean, var, eps=1e-5):
    scale = (gamma / jnp.sqrt(var + eps)).astype(jnp.float32)
    bias = (beta - mean * scale).astype(jnp.float32)
    return scale, bias


def basic_block_nhwc(x_nhwc, params, stride=1):
    """Fused BasicBlock forward.  NHWC in / NHWC out (native kernel layout)."""
    N, H, W, Cin = x_nhwc.shape
    w1, w2 = params["w1"], params["w2"]            # HWIO
    Cmid, Cout = w1.shape[-1], w2.shape[-1]
    has_proj = (stride != 1) or (Cin != Cout)

    s1, b1 = _fold_bn(*params["bn1"])
    s2, b2 = _fold_bn(*params["bn2"])

    # Fold BN scale into conv weights (per output channel), ship them as bf16.
    w1k = (w1.astype(jnp.float32) * s1).reshape(9, Cin, Cmid).astype(jnp.bfloat16)
    w2k = (w2.astype(jnp.float32) * s2).reshape(9, Cmid, Cout).astype(jnp.bfloat16)
    b1k = b1.reshape(1, Cmid)
    b2k = b2.reshape(1, Cout)

    x = x_nhwc.astype(jnp.float32)

    # Zero-pad by 1 and space-to-depth split into stride^2 phases so the
    # kernel only issues static *contiguous* slices (no strided addressing).
    st = stride
    Hp, Wp = H + 2, W + 2
    Hq, Wq = -(-Hp // st), -(-Wp // st)
    xp = jnp.pad(x, ((0, 0), (1, 1 + Hq * st - Hp), (1, 1 + Wq * st - Wp), (0, 0)))
    xph = xp.reshape(N, Hq, st, Wq, st, Cin).transpose(0, 2, 4, 1, 3, 5)
    xph = xph.reshape(N, st * st, Hq, Wq, Cin)

    Ho = (H - 1) // st + 1
    Wo = (W - 1) // st + 1

    inputs = [xph, w1k, b1k, w2k, b2k]
    const_shapes = [(9, Cin, Cmid), (1, Cmid), (9, Cmid, Cout), (1, Cout)]
    if has_proj:
        ssc, bsc = _fold_bn(*params["bnsc"])
        wsck = (params["wsc"].astype(jnp.float32).reshape(Cin, Cout)
                * ssc).astype(jnp.bfloat16)
        inputs += [wsck, bsc.reshape(1, Cout)]
        const_shapes += [(Cin, Cout), (1, Cout)]

    # Per-step VMEM footprint estimate -> vmem_limit_bytes (not hardcoded).
    f32b, bf16b = 4, 2
    xph_bytes = st * st * Hq * Wq * Cin * f32b
    out_bytes = Ho * Wo * Cout * f32b
    w_bytes = sum(math.prod(s) for s in const_shapes) * bf16b
    scratch_bytes = (Ho + 2) * (Wo + 2) * Cmid * f32b
    acc_bytes = Ho * Wo * (Cmid + Cout) * f32b

    def run(lane_dense, buffered):
        def const_spec(shape):
            imap = (lambda b, _n=len(shape): (0,) * _n)
            if buffered:
                try:
                    # Constant operands: single-buffer them (index never moves).
                    return pl.BlockSpec(shape, imap, pipeline_mode=pl.Buffered(1))
                except Exception:
                    pass
            return pl.BlockSpec(shape, imap)

        in_specs = [pl.BlockSpec((None, st * st, Hq, Wq, Cin),
                                 lambda b: (b, 0, 0, 0, 0))]
        in_specs += [const_spec(s) for s in const_shapes]

        if lane_dense:
            out_shape = jax.ShapeDtypeStruct((N, Ho, Wo * Cout), x.dtype)
            out_spec = pl.BlockSpec((None, Ho, Wo * Cout), lambda b: (b, 0, 0))
        else:
            out_shape = jax.ShapeDtypeStruct((N, Ho, Wo, Cout), x.dtype)
            out_spec = pl.BlockSpec((None, Ho, Wo, Cout), lambda b: (b, 0, 0, 0))

        weight_bufs = 1 if buffered else 2
        est = (2 * xph_bytes + 2 * out_bytes + weight_bufs * w_bytes
               + scratch_bytes + acc_bytes)
        vmem_limit = int(min(64 * 2**20, max(32 * 2**20, 2 * est)))

        kernel = functools.partial(
            _basic_block_kernel, stride=st, Ho=Ho, Wo=Wo, Cin=Cin, Cmid=Cmid,
            Cout=Cout, has_proj=has_proj, lane_dense=lane_dense)

        out = pl.pallas_call(
            kernel,
            out_shape=out_shape,
            grid=(N,),
            in_specs=in_specs,
            out_specs=out_spec,
            scratch_shapes=[pltpu.VMEM((Ho + 2, Wo + 2, Cmid), jnp.float32)],
            compiler_params=pltpu.CompilerParams(
                dimension_semantics=("parallel",),   # batch elems independent
                vmem_limit_bytes=vmem_limit),
        )(*inputs)
        out = jax.block_until_ready(out)
        if lane_dense:
            out = out.reshape(N, Ho, Wo, Cout)
        return out

    # Prefer the fully-optimized variant; degrade gracefully if the installed
    # Pallas/Mosaic rejects Buffered(1) or the lane-dense output reshape.
    variants = ((True, True), (True, False), (False, False))
    for idx, (ld, bf) in enumerate(variants):
        try:
            return run(ld, bf)
        except Exception:
            if idx == len(variants) - 1:
                raise


def basic_block(x_nchw, params, stride=1):
    """PyTorch-layout wrapper (NCHW in / NCHW out) around basic_block_nhwc."""
    x = jnp.transpose(x_nchw, (0, 2, 3, 1))
    y = basic_block_nhwc(x, params, stride=stride)
    return jnp.transpose(y, (0, 3, 1, 2))


def _reference(x_nchw, params, stride, eps=1e-5):
    """Pure-JAX (XLA) port of BasicBlock.forward (eval-mode BN, f32)."""
    x = jnp.transpose(x_nchw, (0, 2, 3, 1)).astype(jnp.float32)
    dn = ("NHWC", "HWIO", "NHWC")
    hp = jax.lax.Precision.HIGHEST

    def bn(h, stats):
        gamma, beta, mean, var = stats
        return (h - mean) * (gamma / jnp.sqrt(var + eps)) + beta

    h = jax.lax.conv_general_dilated(x, params["w1"].astype(jnp.float32),
                                     (stride, stride), ((1, 1), (1, 1)),
                                     dimension_numbers=dn, precision=hp)
    h = jnp.maximum(bn(h, params["bn1"]), 0.0)
    h = jax.lax.conv_general_dilated(h, params["w2"].astype(jnp.float32),
                                     (1, 1), ((1, 1), (1, 1)),
                                     dimension_numbers=dn, precision=hp)
    h = bn(h, params["bn2"])
    Cin, Cout = params["w1"].shape[2], params["w2"].shape[3]
    if stride != 1 or Cin != Cout:
        sc = jax.lax.conv_general_dilated(x, params["wsc"].astype(jnp.float32),
                                          (stride, stride), ((0, 0), (0, 0)),
                                          dimension_numbers=dn, precision=hp)
        sc = bn(sc, params["bnsc"])
    else:
        sc = x
    y = jnp.maximum(h + sc, 0.0)
    return jnp.transpose(y, (0, 3, 1, 2))


if __name__ == "__main__":
    key = jax.random.PRNGKey(0)

    def make_case(k, N, Cin, Cout, H, W, stride):
        ks = jax.random.split(k, 8)

        def bn_stats(kk, c):
            k1, k2, k3, k4 = jax.random.split(kk, 4)
            return (1.0 + 0.1 * jax.random.normal(k1, (c,), jnp.float32),
                    0.1 * jax.random.normal(k2, (c,), jnp.float32),
                    0.1 * jax.random.normal(k3, (c,), jnp.float32),
                    jax.random.uniform(k4, (c,), jnp.float32, 0.5, 1.5))

        Cmid = Cout
        x = jax.random.normal(ks[0], (N, Cin, H, W), jnp.float32)
        params = {
            "w1": jax.random.normal(ks[1], (3, 3, Cin, Cmid), jnp.float32) / jnp.sqrt(9.0 * Cin),
            "bn1": bn_stats(ks[2], Cmid),
            "w2": jax.random.normal(ks[3], (3, 3, Cmid, Cout), jnp.float32) / jnp.sqrt(9.0 * Cmid),
            "bn2": bn_stats(ks[4], Cout),
        }
        if stride != 1 or Cin != Cout:
            params["wsc"] = jax.random.normal(ks[5], (1, 1, Cin, Cout), jnp.float32) / jnp.sqrt(1.0 * Cin)
            params["bnsc"] = bn_stats(ks[6], Cout)
        return x, params

    k1, k2 = jax.random.split(key)

    # Case A: downsampling block (stride 2, channel expansion -> projection).
    xA, pA = make_case(k1, N=2, Cin=4, Cout=8, H=16, W=16, stride=2)
    outA = jax.block_until_ready(basic_block(xA, pA, stride=2))
    refA = _reference(xA, pA, stride=2)
    assert outA.shape == (2, 8, 8, 8), outA.shape
    errA_max = float(jnp.max(jnp.abs(outA - refA)))
    errA_mean = float(jnp.mean(jnp.abs(outA - refA)))
    # bf16 matmul operands with f32 accumulation -> loose max-err, tight mean.
    assert jnp.allclose(outA, refA, atol=1e-1, rtol=1e-1), errA_max
    assert errA_mean < 2e-2, errA_mean

    # Case B: identity-shortcut block (stride 1, same channel count).
    xB, pB = make_case(k2, N=2, Cin=8, Cout=8, H=16, W=16, stride=1)
    outB = jax.block_until_ready(basic_block(xB, pB, stride=1))
    refB = _reference(xB, pB, stride=1)
    assert outB.shape == (2, 8, 16, 16), outB.shape
    errB_max = float(jnp.max(jnp.abs(outB - refB)))
    errB_mean = float(jnp.mean(jnp.abs(outB - refB)))
    assert jnp.allclose(outB, refB, atol=1e-1, rtol=1e-1), errB_max
    assert errB_mean < 2e-2, errB_mean

    print("KERNEL_OK")
</pallas_src>

<mosaic_0001>
module attributes {stable_mosaic.version = 11 : i64} {
  func.func @_basic_block_kernel(%arg0: i32, %arg1: memref<1x4x9x9x4xf32, #tpu.memory_space<vmem>>, %arg2: memref<9x4x8xbf16, #tpu.memory_space<vmem>>, %arg3: memref<1x8xf32, #tpu.memory_space<vmem>>, %arg4: memref<9x8x8xbf16, #tpu.memory_space<vmem>>, %arg5: memref<1x8xf32, #tpu.memory_space<vmem>>, %arg6: memref<4x8xbf16, #tpu.memory_space<vmem>>, %arg7: memref<1x8xf32, #tpu.memory_space<vmem>>, %arg8: memref<1x8x64xf32, #tpu.memory_space<vmem>>, %arg9: memref<10x10x8xf32, #tpu.memory_space<vmem>>) attributes {dimension_semantics = [#tpu.dimension_semantics<parallel>], iteration_bounds = array<i64: 2>, scalar_prefetch = 0 : i64, scratch_operands = 1 : i64, tpu.core_type = #tpu.core_type<tc>, window_params = [{transform_indices = @transform_0, window_bounds = array<i64: 1, 4, 9, 9, 4>}, {pipeline_mode = #tpu.pipeline_mode<synchronous>, transform_indices = @transform_1, window_bounds = array<i64: 9, 4, 8>}, {pipeline_mode = #tpu.pipeline_mode<synchronous>, transform_indices = @transform_2, window_bounds = array<i64: 1, 8>}, {pipeline_mode = #tpu.pipeline_mode<synchronous>, transform_indices = @transform_3, window_bounds = array<i64: 9, 8, 8>}, {pipeline_mode = #tpu.pipeline_mode<synchronous>, transform_indices = @transform_4, window_bounds = array<i64: 1, 8>}, {pipeline_mode = #tpu.pipeline_mode<synchronous>, transform_indices = @transform_5, window_bounds = array<i64: 4, 8>}, {pipeline_mode = #tpu.pipeline_mode<synchronous>, transform_indices = @transform_6, window_bounds = array<i64: 1, 8>}, {transform_indices = @transform_7, window_bounds = array<i64: 1, 8, 64>}]} {
    %cst = arith.constant 0.000000e+00 : f32
    %0 = vector.broadcast %cst : f32 to vector<64x8xf32>
    %c0 = arith.constant 0 : index
    %c0_0 = arith.constant 0 : index
    %c0_1 = arith.constant 0 : index
    %c0_2 = arith.constant 0 : index
    %c0_3 = arith.constant 0 : index
    %1 = vector.load %arg1[%c0, %c0_0, %c0_1, %c0_2, %c0_3] : memref<1x4x9x9x4xf32, #tpu.memory_space<vmem>>, vector<1x1x8x8x4xf32>
    %2 = vector.shape_cast %1 : vector<1x1x8x8x4xf32> to vector<8x8x4xf32>
    %3 = vector.shape_cast %2 : vector<8x8x4xf32> to vector<64x4xf32>
    %4 = arith.truncf %3 : vector<64x4xf32> to vector<64x4xbf16>
    %c0_4 = arith.constant 0 : index
    %c0_5 = arith.constant 0 : index
    %c0_6 = arith.constant 0 : index
    %5 = vector.load %arg2[%c0_4, %c0_5, %c0_6] : memref<9x4x8xbf16, #tpu.memory_space<vmem>>, vector<1x4x8xbf16>
    %6 = vector.shape_cast %5 : vector<1x4x8xbf16> to vector<4x8xbf16>
    %cst_7 = arith.constant dense<0.000000e+00> : vector<64x8xf32>
    %7 = tpu.matmul %4, %6, %cst_7 {dimension_numbers = #tpu.dot_dimension_numbers<[1], [0], [0], [1], [0, 0, 1, 1], [], []>} : vector<64x4xbf16>, vector<4x8xbf16>, vector<64x8xf32> -> vector<64x8xf32>
    %8 = arith.addf %0, %7 : vector<64x8xf32>
    %c0_8 = arith.constant 0 : index
    %c1 = arith.constant 1 : index
    %c0_9 = arith.constant 0 : index
    %c0_10 = arith.constant 0 : index
    %c0_11 = arith.constant 0 : index
    %9 = vector.load %arg1[%c0_8, %c1, %c0_9, %c0_10, %c0_11] : memref<1x4x9x9x4xf32, #tpu.memory_space<vmem>>, vector<1x1x8x8x4xf32>
    %10 = vector.shape_cast %9 : vector<1x1x8x8x4xf32> to vector<8x8x4xf32>
    %11 = vector.shape_cast %10 : vector<8x8x4xf32> to vector<64x4xf32>
    %12 = arith.truncf %11 : vector<64x4xf32> to vector<64x4xbf16>
    %c1_12 = arith.constant 1 : index
    %c0_13 = arith.constant 0 : index
    %c0_14 = arith.constant 0 : index
    %13 = vector.load %arg2[%c1_12, %c0_13, %c0_14] : memref<9x4x8xbf16, #tpu.memory_space<vmem>>, vector<1x4x8xbf16>
    %14 = vector.shape_cast %13 : vector<1x4x8xbf16> to vector<4x8xbf16>
    %cst_15 = arith.constant dense<0.000000e+00> : vector<64x8xf32>
    %15 = tpu.matmul %12, %14, %cst_15 {dimension_numbers = #tpu.dot_dimension_numbers<[1], [0], [0], [1], [0, 0, 1, 1], [], []>} : vector<64x4xbf16>, vector<4x8xbf16>, vector<64x8xf32> -> vector<64x8xf32>
    %16 = arith.addf %8, %15 : vector<64x8xf32>
    %c0_16 = arith.constant 0 : index
    %c0_17 = arith.constant 0 : index
    %c0_18 = arith.constant 0 : index
    %c1_19 = arith.constant 1 : index
    %c0_20 = arith.constant 0 : index
    %17 = vector.load %arg1[%c0_16, %c0_17, %c0_18, %c1_19, %c0_20] : memref<1x4x9x9x4xf32, #tpu.memory_space<vmem>>, vector<1x1x8x8x4xf32>
    %18 = vector.shape_cast %17 : vector<1x1x8x8x4xf32> to vector<8x8x4xf32>
    %19 = vector.shape_cast %18 : vector<8x8x4xf32> to vector<64x4xf32>
    %20 = arith.truncf %19 : vector<64x4xf32> to vector<64x4xbf16>
    %c2 = arith.constant 2 : index
    %c0_21 = arith.constant 0 : index
    %c0_22 = arith.constant 0 : index
    %21 = vector.load %arg2[%c2, %c0_21, %c0_22] : memref<9x4x8xbf16, #tpu.memory_space<vmem>>, vector<1x4x8xbf16>
    %22 = vector.shape_cast %21 : vector<1x4x8xbf16> to vector<4x8xbf16>
    %cst_23 = arith.constant dense<0.000000e+00> : vector<64x8xf32>
    %23 = tpu.matmul %20, %22, %cst_23 {dimension_numbers = #tpu.dot_dimension_numbers<[1], [0], [0], [1], [0, 0, 1, 1], [], []>} : vector<64x4xbf16>, vector<4x8xbf16>, vector<64x8xf32> -> vector<64x8xf32>
    %24 = arith.addf %16, %23 : vector<64x8xf32>
    %c0_24 = arith.constant 0 : index
    %c2_25 = arith.constant 2 : index
    %c0_26 = arith.constant 0 : index
    %c0_27 = arith.constant 0 : index
    %c0_28 = arith.constant 0 : index
    %25 = vector.load %arg1[%c0_24, %c2_25, %c0_26, %c0_27, %c0_28] : memref<1x4x9x9x4xf32, #tpu.memory_space<vmem>>, vector<1x1x8x8x4xf32>
    %26 = vector.shape_cast %25 : vector<1x1x8x8x4xf32> to vector<8x8x4xf32>
    %27 = vector.shape_cast %26 : vector<8x8x4xf32> to vector<64x4xf32>
    %28 = arith.truncf %27 : vector<64x4xf32> to vector<64x4xbf16>
    %c3 = arith.constant 3 : index
    %c0_29 = arith.constant 0 : index
    %c0_30 = arith.constant 0 : index
    %29 = vector.load %arg2[%c3, %c0_29, %c0_30] : memref<9x4x8xbf16, #tpu.memory_space<vmem>>, vector<1x4x8xbf16>
    %30 = vector.shape_cast %29 : vector<1x4x8xbf16> to vector<4x8xbf16>
    %cst_31 = arith.constant dense<0.000000e+00> : vector<64x8xf32>
    %31 = tpu.matmul %28, %30, %cst_31 {dimension_numbers = #tpu.dot_dimension_numbers<[1], [0], [0], [1], [0, 0, 1, 1], [], []>} : vector<64x4xbf16>, vector<4x8xbf16>, vector<64x8xf32> -> vector<64x8xf32>
    %32 = arith.addf %24, %31 : vector<64x8xf32>
    %c0_32 = arith.constant 0 : index
    %c3_33 = arith.constant 3 : index
    %c0_34 = arith.constant 0 : index
    %c0_35 = arith.constant 0 : index
    %c0_36 = arith.constant 0 : index
    %33 = vector.load %arg1[%c0_32, %c3_33, %c0_34, %c0_35, %c0_36] : memref<1x4x9x9x4xf32, #tpu.memory_space<vmem>>, vector<1x1x8x8x4xf32>
    %34 = vector.shape_cast %33 : vector<1x1x8x8x4xf32> to vector<8x8x4xf32>
    %35 = vector.shape_cast %34 : vector<8x8x4xf32> to vector<64x4xf32>
    %36 = arith.truncf %35 : vector<64x4xf32> to vector<64x4xbf16>
    %c4 = arith.constant 4 : index
    %c0_37 = arith.constant 0 : index
    %c0_38 = arith.constant 0 : index
    %37 = vector.load %arg2[%c4, %c0_37, %c0_38] : memref<9x4x8xbf16, #tpu.memory_space<vmem>>, vector<1x4x8xbf16>
    %38 = vector.shape_cast %37 : vector<1x4x8xbf16> to vector<4x8xbf16>
    %cst_39 = arith.constant dense<0.000000e+00> : vector<64x8xf32>
    %39 = tpu.matmul %36, %38, %cst_39 {dimension_numbers = #tpu.dot_dimension_numbers<[1], [0], [0], [1], [0, 0, 1, 1], [], []>} : vector<64x4xbf16>, vector<4x8xbf16>, vector<64x8xf32> -> vector<64x8xf32>
    %40 = arith.addf %32, %39 : vector<64x8xf32>
    %c0_40 = arith.constant 0 : index
    %c2_41 = arith.constant 2 : index
    %c0_42 = arith.constant 0 : index
    %c1_43 = arith.constant 1 : index
    %c0_44 = arith.constant 0 : index
    %41 = vector.load %arg1[%c0_40, %c2_41, %c0_42, %c1_43, %c0_44] : memref<1x4x9x9x4xf32, #tpu.memory_space<vmem>>, vector<1x1x8x8x4xf32>
    %42 = vector.shape_cast %41 : vector<1x1x8x8x4xf32> to vector<8x8x4xf32>
    %43 = vector.shape_cast %42 : vector<8x8x4xf32> to vector<64x4xf32>
    %44 = arith.truncf %43 : vector<64x4xf32> to vector<64x4xbf16>
    %c5 = arith.constant 5 : index
    %c0_45 = arith.constant 0 : index
    %c0_46 = arith.constant 0 : index
    %45 = vector.load %arg2[%c5, %c0_45, %c0_46] : memref<9x4x8xbf16, #tpu.memory_space<vmem>>, vector<1x4x8xbf16>
    %46 = vector.shape_cast %45 : vector<1x4x8xbf16> to vector<4x8xbf16>
    %cst_47 = arith.constant dense<0.000000e+00> : vector<64x8xf32>
    %47 = tpu.matmul %44, %46, %cst_47 {dimension_numbers = #tpu.dot_dimension_numbers<[1], [0], [0], [1], [0, 0, 1, 1], [], []>} : vector<64x4xbf16>, vector<4x8xbf16>, vector<64x8xf32> -> vector<64x8xf32>
    %48 = arith.addf %40, %47 : vector<64x8xf32>
    %c0_48 = arith.constant 0 : index
    %c0_49 = arith.constant 0 : index
    %c1_50 = arith.constant 1 : index
    %c0_51 = arith.constant 0 : index
    %c0_52 = arith.constant 0 : index
    %49 = vector.load %arg1[%c0_48, %c0_49, %c1_50, %c0_51, %c0_52] : memref<1x4x9x9x4xf32, #tpu.memory_space<vmem>>, vector<1x1x8x8x4xf32>
    %50 = vector.shape_cast %49 : vector<1x1x8x8x4xf32> to vector<8x8x4xf32>
    %51 = vector.shape_cast %50 : vector<8x8x4xf32> to vector<64x4xf32>
    %52 = arith.truncf %51 : vector<64x4xf32> to vector<64x4xbf16>
    %c6 = arith.constant 6 : index
    %c0_53 = arith.constant 0 : index
    %c0_54 = arith.constant 0 : index
    %53 = vector.load %arg2[%c6, %c0_53, %c0_54] : memref<9x4x8xbf16, #tpu.memory_space<vmem>>, vector<1x4x8xbf16>
    %54 = vector.shape_cast %53 : vector<1x4x8xbf16> to vector<4x8xbf16>
    %cst_55 = arith.constant dense<0.000000e+00> : vector<64x8xf32>
    %55 = tpu.matmul %52, %54, %cst_55 {dimension_numbers = #tpu.dot_dimension_numbers<[1], [0], [0], [1], [0, 0, 1, 1], [], []>} : vector<64x4xbf16>, vector<4x8xbf16>, vector<64x8xf32> -> vector<64x8xf32>
    %56 = arith.addf %48, %55 : vector<64x8xf32>
    %c0_56 = arith.constant 0 : index
    %c1_57 = arith.constant 1 : index
    %c1_58 = arith.constant 1 : index
    %c0_59 = arith.constant 0 : index
    %c0_60 = arith.constant 0 : index
    %57 = vector.load %arg1[%c0_56, %c1_57, %c1_58, %c0_59, %c0_60] : memref<1x4x9x9x4xf32, #tpu.memory_space<vmem>>, vector<1x1x8x8x4xf32>
    %58 = vector.shape_cast %57 : vector<1x1x8x8x4xf32> to vector<8x8x4xf32>
    %59 = vector.shape_cast %58 : vector<8x8x4xf32> to vector<64x4xf32>
    %60 = arith.truncf %59 : vector<64x4xf32> to vector<64x4xbf16>
    %c7 = arith.constant 7 : index
    %c0_61 = arith.constant 0 : index
    %c0_62 = arith.constant 0 : index
    %61 = vector.load %arg2[%c7, %c0_61, %c0_62] : memref<9x4x8xbf16, #tpu.memory_space<vmem>>, vector<1x4x8xbf16>
    %62 = vector.shape_cast %61 : vector<1x4x8xbf16> to vector<4x8xbf16>
    %cst_63 = arith.constant dense<0.000000e+00> : vector<64x8xf32>
    %63 = tpu.matmul %60, %62, %cst_63 {dimension_numbers = #tpu.dot_dimension_numbers<[1], [0], [0], [1], [0, 0, 1, 1], [], []>} : vector<64x4xbf16>, vector<4x8xbf16>, vector<64x8xf32> -> vector<64x8xf32>
    %64 = arith.addf %56, %63 : vector<64x8xf32>
    %c0_64 = arith.constant 0 : index
    %c0_65 = arith.constant 0 : index
    %c1_66 = arith.constant 1 : index
    %c1_67 = arith.constant 1 : index
    %c0_68 = arith.constant 0 : index
    %65 = vector.load %arg1[%c0_64, %c0_65, %c1_66, %c1_67, %c0_68] : memref<1x4x9x9x4xf32, #tpu.memory_space<vmem>>, vector<1x1x8x8x4xf32>
    %66 = vector.shape_cast %65 : vector<1x1x8x8x4xf32> to vector<8x8x4xf32>
    %67 = vector.shape_cast %66 : vector<8x8x4xf32> to vector<64x4xf32>
    %68 = arith.truncf %67 : vector<64x4xf32> to vector<64x4xbf16>
    %c8 = arith.constant 8 : index
    %c0_69 = arith.constant 0 : index
    %c0_70 = arith.constant 0 : index
    %69 = vector.load %arg2[%c8, %c0_69, %c0_70] : memref<9x4x8xbf16, #tpu.memory_space<vmem>>, vector<1x4x8xbf16>
    %70 = vector.shape_cast %69 : vector<1x4x8xbf16> to vector<4x8xbf16>
    %cst_71 = arith.constant dense<0.000000e+00> : vector<64x8xf32>
    %71 = tpu.matmul %68, %70, %cst_71 {dimension_numbers = #tpu.dot_dimension_numbers<[1], [0], [0], [1], [0, 0, 1, 1], [], []>} : vector<64x4xbf16>, vector<4x8xbf16>, vector<64x8xf32> -> vector<64x8xf32>
    %72 = arith.addf %64, %71 : vector<64x8xf32>
    %c0_72 = arith.constant 0 : index
    %c0_73 = arith.constant 0 : index
    %73 = vector.load %arg3[%c0_72, %c0_73] : memref<1x8xf32, #tpu.memory_space<vmem>>, vector<1x8xf32>
    %74 = vector.broadcast %73 : vector<1x8xf32> to vector<64x8xf32>
    %75 = arith.addf %72, %74 : vector<64x8xf32>
    %cst_74 = arith.constant 0.000000e+00 : f32
    %76 = vector.broadcast %cst_74 : f32 to vector<64x8xf32>
    %77 = arith.maximumf %75, %76 : vector<64x8xf32>
    %cst_75 = arith.constant 0.000000e+00 : f32
    %78 = vector.broadcast %cst_75 : f32 to vector<1x10x8xf32>
    %cst_76 = arith.constant 0.000000e+00 : f32
    %79 = vector.broadcast %cst_76 : f32 to vector<8x1x8xf32>
    %c0_77 = arith.constant 0 : index
    %c0_78 = arith.constant 0 : index
    %c0_79 = arith.constant 0 : index
    %80 = vector.load %arg9[%c0_77, %c0_78, %c0_79] : memref<10x10x8xf32, #tpu.memory_space<vmem>>, vector<1x10x8xf32>
    tpu.vector_store %arg9[%c0_77, %c0_78, %c0_79], %78 {strides = array<i32>} : memref<10x10x8xf32, #tpu.memory_space<vmem>>, vector<1x10x8xf32>,
    %c9 = arith.constant 9 : index
    %c0_80 = arith.constant 0 : index
    %c0_81 = arith.constant 0 : index
    %81 = vector.load %arg9[%c9, %c0_80, %c0_81] : memref<10x10x8xf32, #tpu.memory_space<vmem>>, vector<1x10x8xf32>
    tpu.vector_store %arg9[%c9, %c0_80, %c0_81], %78 {strides = array<i32>} : memref<10x10x8xf32, #tpu.memory_space<vmem>>, vector<1x10x8xf32>,
    %c1_82 = arith.constant 1 : index
    %c0_83 = arith.constant 0 : index
    %c0_84 = arith.constant 0 : index
    %82 = vector.load %arg9[%c1_82, %c0_83, %c0_84] : memref<10x10x8xf32, #tpu.memory_space<vmem>>, vector<8x1x8xf32>
    tpu.vector_store %arg9[%c1_82, %c0_83, %c0_84], %79 {strides = array<i32>} : memref<10x10x8xf32, #tpu.memory_space<vmem>>, vector<8x1x8xf32>,
    %c1_85 = arith.constant 1 : index
    %c9_86 = arith.constant 9 : index
    %c0_87 = arith.constant 0 : index
    %83 = vector.load %arg9[%c1_85, %c9_86, %c0_87] : memref<10x10x8xf32, #tpu.memory_space<vmem>>, vector<8x1x8xf32>
    tpu.vector_store %arg9[%c1_85, %c9_86, %c0_87], %79 {strides = array<i32>} : memref<10x10x8xf32, #tpu.memory_space<vmem>>, vector<8x1x8xf32>,
    %84 = vector.shape_cast %77 : vector<64x8xf32> to vector<8x8x8xf32>
    %c1_88 = arith.constant 1 : index
    %c1_89 = arith.constant 1 : index
    %c0_90 = arith.constant 0 : index
    %85 = vector.load %arg9[%c1_88, %c1_89, %c0_90] : memref<10x10x8xf32, #tpu.memory_space<vmem>>, vector<8x8x8xf32>
    tpu.vector_store %arg9[%c1_88, %c1_89, %c0_90], %84 {strides = array<i32>} : memref<10x10x8xf32, #tpu.memory_space<vmem>>, vector<8x8x8xf32>,
    %cst_91 = arith.constant 0.000000e+00 : f32
    %86 = vector.broadcast %cst_91 : f32 to vector<64x8xf32>
    %c0_92 = arith.constant 0 : index
    %c0_93 = arith.constant 0 : index
    %c0_94 = arith.constant 0 : index
    %87 = vector.load %arg9[%c0_92, %c0_93, %c0_94] : memref<10x10x8xf32, #tpu.memory_space<vmem>>, vector<8x8x8xf32>
    %88 = vector.shape_cast %87 : vector<8x8x8xf32> to vector<64x8xf32>
    %89 = arith.truncf %88 : vector<64x8xf32> to vector<64x8xbf16>
    %c0_95 = arith.constant 0 : index
    %c0_96 = arith.constant 0 : index
    %c0_97 = arith.constant 0 : index
    %90 = vector.load %arg4[%c0_95, %c0_96, %c0_97] : memref<9x8x8xbf16, #tpu.memory_space<vmem>>, vector<1x8x8xbf16>
    %91 = vector.shape_cast %90 : vector<1x8x8xbf16> to vector<8x8xbf16>
    %cst_98 = arith.constant dense<0.000000e+00> : vector<64x8xf32>
    %92 = tpu.matmul %89, %91, %cst_98 {dimension_numbers = #tpu.dot_dimension_numbers<[1], [0], [0], [1], [0, 0, 1, 1], [], []>} : vector<64x8xbf16>, vector<8x8xbf16>, vector<64x8xf32> -> vector<64x8xf32>
    %93 = arith.addf %86, %92 : vector<64x8xf32>
    %c0_99 = arith.constant 0 : index
    %c1_100 = arith.constant 1 : index
    %c0_101 = arith.constant 0 : index
    %94 = vector.load %arg9[%c0_99, %c1_100, %c0_101] : memref<10x10x8xf32, #tpu.memory_space<vmem>>, vector<8x8x8xf32>
    %95 = vector.shape_cast %94 : vector<8x8x8xf32> to vector<64x8xf32>
    %96 = arith.truncf %95 : vector<64x8xf32> to vector<64x8xbf16>
    %c1_102 = arith.constant 1 : index
    %c0_103 = arith.constant 0 : index
    %c0_104 = arith.constant 0 : index
    %97 = vector.load %arg4[%c1_102, %c0_103, %c0_104] : memref<9x8x8xbf16, #tpu.memory_space<vmem>>, vector<1x8x8xbf16>
    %98 = vector.shape_cast %97 : vector<1x8x8xbf16> to vector<8x8xbf16>
    %cst_105 = arith.constant dense<0.000000e+00> : vector<64x8xf32>
    %99 = tpu.matmul %96, %98, %cst_105 {dimension_numbers = #tpu.dot_dimension_numbers<[1], [0], [0], [1], [0, 0, 1, 1], [], []>} : vector<64x8xbf16>, vector<8x8xbf16>, vector<64x8xf32> -> vector<64x8xf32>
    %100 = arith.addf %93, %99 : vector<64x8xf32>
    %c0_106 = arith.constant 0 : index
    %c2_107 = arith.constant 2 : index
    %c0_108 = arith.constant 0 : index
    %101 = vector.load %arg9[%c0_106, %c2_107, %c0_108] : memref<10x10x8xf32, #tpu.memory_space<vmem>>, vector<8x8x8xf32>
    %102 = vector.shape_cast %101 : vector<8x8x8xf32> to vector<64x8xf32>
    %103 = arith.truncf %102 : vector<64x8xf32> to vector<64x8xbf16>
    %c2_109 = arith.constant 2 : index
    %c0_110 = arith.constant 0 : index
    %c0_111 = arith.constant 0 : index
    %104 = vector.load %arg4[%c2_109, %c0_110, %c0_111] : memref<9x8x8xbf16, #tpu.memory_space<vmem>>, vector<1x8x8xbf16>
    %105 = vector.shape_cast %104 : vector<1x8x8xbf16> to vector<8x8xbf16>
    %cst_112 = arith.constant dense<0.000000e+00> : vector<64x8xf32>
    %106 = tpu.matmul %103, %105, %cst_112 {dimension_numbers = #tpu.dot_dimension_numbers<[1], [0], [0], [1], [0, 0, 1, 1], [], []>} : vector<64x8xbf16>, vector<8x8xbf16>, vector<64x8xf32> -> vector<64x8xf32>
    %107 = arith.addf %100, %106 : vector<64x8xf32>
    %c1_113 = arith.constant 1 : index
    %c0_114 = arith.constant 0 : index
    %c0_115 = arith.constant 0 : index
    %108 = vector.load %arg9[%c1_113, %c0_114, %c0_115] : memref<10x10x8xf32, #tpu.memory_space<vmem>>, vector<8x8x8xf32>
    %109 = vector.shape_cast %108 : vector<8x8x8xf32> to vector<64x8xf32>
    %110 = arith.truncf %109 : vector<64x8xf32> to vector<64x8xbf16>
    %c3_116 = arith.constant 3 : index
    %c0_117 = arith.constant 0 : index
    %c0_118 = arith.constant 0 : index
    %111 = vector.load %arg4[%c3_116, %c0_117, %c0_118] : memref<9x8x8xbf16, #tpu.memory_space<vmem>>, vector<1x8x8xbf16>
    %112 = vector.shape_cast %111 : vector<1x8x8xbf16> to vector<8x8xbf16>
    %cst_119 = arith.constant dense<0.000000e+00> : vector<64x8xf32>
    %113 = tpu.matmul %110, %112, %cst_119 {dimension_numbers = #tpu.dot_dimension_numbers<[1], [0], [0], [1], [0, 0, 1, 1], [], []>} : vector<64x8xbf16>, vector<8x8xbf16>, vector<64x8xf32> -> vector<64x8xf32>
    %114 = arith.addf %107, %113 : vector<64x8xf32>
    %c1_120 = arith.constant 1 : index
    %c1_121 = arith.constant 1 : index
    %c0_122 = arith.constant 0 : index
    %115 = vector.load %arg9[%c1_120, %c1_121, %c0_122] : memref<10x10x8xf32, #tpu.memory_space<vmem>>, vector<8x8x8xf32>
    %116 = vector.shape_cast %115 : vector<8x8x8xf32> to vector<64x8xf32>
    %117 = arith.truncf %116 : vector<64x8xf32> to vector<64x8xbf16>
    %c4_123 = arith.constant 4 : index
    %c0_124 = arith.constant 0 : index
    %c0_125 = arith.constant 0 : index
    %118 = vector.load %arg4[%c4_123, %c0_124, %c0_125] : memref<9x8x8xbf16, #tpu.memory_space<vmem>>, vector<1x8x8xbf16>
    %119 = vector.shape_cast %118 : vector<1x8x8xbf16> to vector<8x8xbf16>
    %cst_126 = arith.constant dense<0.000000e+00> : vector<64x8xf32>
    %120 = tpu.matmul %117, %119, %cst_126 {dimension_numbers = #tpu.dot_dimension_numbers<[1], [0], [0], [1], [0, 0, 1, 1], [], []>} : vector<64x8xbf16>, vector<8x8xbf16>, vector<64x8xf32> -> vector<64x8xf32>
    %121 = arith.addf %114, %120 : vector<64x8xf32>
    %c1_127 = arith.constant 1 : index
    %c2_128 = arith.constant 2 : index
    %c0_129 = arith.constant 0 : index
    %122 = vector.load %arg9[%c1_127, %c2_128, %c0_129] : memref<10x10x8xf32, #tpu.memory_space<vmem>>, vector<8x8x8xf32>
    %123 = vector.shape_cast %122 : vector<8x8x8xf32> to vector<64x8xf32>
    %124 = arith.truncf %123 : vector<64x8xf32> to vector<64x8xbf16>
    %c5_130 = arith.constant 5 : index
    %c0_131 = arith.constant 0 : index
    %c0_132 = arith.constant 0 : index
    %125 = vector.load %arg4[%c5_130, %c0_131, %c0_132] : memref<9x8x8xbf16, #tpu.memory_space<vmem>>, vector<1x8x8xbf16>
    %126 = vector.shape_cast %125 : vector<1x8x8xbf16> to vector<8x8xbf16>
    %cst_133 = arith.constant dense<0.000000e+00> : vector<64x8xf32>
    %127 = tpu.matmul %124, %126, %cst_133 {dimension_numbers = #tpu.dot_dimension_numbers<[1], [0], [0], [1], [0, 0, 1, 1], [], []>} : vector<64x8xbf16>, vector<8x8xbf16>, vector<64x8xf32> -> vector<64x8xf32>
    %128 = arith.addf %121, %127 : vector<64x8xf32>
    %c2_134 = arith.constant 2 : index
    %c0_135 = arith.constant 0 : index
    %c0_136 = arith.constant 0 : index
    %129 = vector.load %arg9[%c2_134, %c0_135, %c0_136] : memref<10x10x8xf32, #tpu.memory_space<vmem>>, vector<8x8x8xf32>
    %130 = vector.shape_cast %129 : vector<8x8x8xf32> to vector<64x8xf32>
    %131 = arith.truncf %130 : vector<64x8xf32> to vector<64x8xbf16>
    %c6_137 = arith.constant 6 : index
    %c0_138 = arith.constant 0 : index
    %c0_139 = arith.constant 0 : index
    %132 = vector.load %arg4[%c6_137, %c0_138, %c0_139] : memref<9x8x8xbf16, #tpu.memory_space<vmem>>, vector<1x8x8xbf16>
    %133 = vector.shape_cast %132 : vector<1x8x8xbf16> to vector<8x8xbf16>
    %cst_140 = arith.constant dense<0.000000e+00> : vector<64x8xf32>
    %134 = tpu.matmul %131, %133, %cst_140 {dimension_numbers = #tpu.dot_dimension_numbers<[1], [0], [0], [1], [0, 0, 1, 1], [], []>} : vector<64x8xbf16>, vector<8x8xbf16>, vector<64x8xf32> -> vector<64x8xf32>
    %135 = arith.addf %128, %134 : vector<64x8xf32>
    %c2_141 = arith.constant 2 : index
    %c1_142 = arith.constant 1 : index
    %c0_143 = arith.constant 0 : index
    %136 = vector.load %arg9[%c2_141, %c1_142, %c0_143] : memref<10x10x8xf32, #tpu.memory_space<vmem>>, vector<8x8x8xf32>
    %137 = vector.shape_cast %136 : vector<8x8x8xf32> to vector<64x8xf32>
    %138 = arith.truncf %137 : vector<64x8xf32> to vector<64x8xbf16>
    %c7_144 = arith.constant 7 : index
    %c0_145 = arith.constant 0 : index
    %c0_146 = arith.constant 0 : index
    %139 = vector.load %arg4[%c7_144, %c0_145, %c0_146] : memref<9x8x8xbf16, #tpu.memory_space<vmem>>, vector<1x8x8xbf16>
    %140 = vector.shape_cast %139 : vector<1x8x8xbf16> to vector<8x8xbf16>
    %cst_147 = arith.constant dense<0.000000e+00> : vector<64x8xf32>
    %141 = tpu.matmul %138, %140, %cst_147 {dimension_numbers = #tpu.dot_dimension_numbers<[1], [0], [0], [1], [0, 0, 1, 1], [], []>} : vector<64x8xbf16>, vector<8x8xbf16>, vector<64x8xf32> -> vector<64x8xf32>
    %142 = arith.addf %135, %141 : vector<64x8xf32>
    %c2_148 = arith.constant 2 : index
    %c2_149 = arith.constant 2 : index
    %c0_150 = arith.constant 0 : index
    %143 = vector.load %arg9[%c2_148, %c2_149, %c0_150] : memref<10x10x8xf32, #tpu.memory_space<vmem>>, vector<8x8x8xf32>
    %144 = vector.shape_cast %143 : vector<8x8x8xf32> to vector<64x8xf32>
    %145 = arith.truncf %144 : vector<64x8xf32> to vector<64x8xbf16>
    %c8_151 = arith.constant 8 : index
    %c0_152 = arith.constant 0 : index
    %c0_153 = arith.constant 0 : index
    %146 = vector.load %arg4[%c8_151, %c0_152, %c0_153] : memref<9x8x8xbf16, #tpu.memory_space<vmem>>, vector<1x8x8xbf16>
    %147 = vector.shape_cast %146 : vector<1x8x8xbf16> to vector<8x8xbf16>
    %cst_154 = arith.constant dense<0.000000e+00> : vector<64x8xf32>
    %148 = tpu.matmul %145, %147, %cst_154 {dimension_numbers = #tpu.dot_dimension_numbers<[1], [0], [0], [1], [0, 0, 1, 1], [], []>} : vector<64x8xbf16>, vector<8x8xbf16>, vector<64x8xf32> -> vector<64x8xf32>
    %149 = arith.addf %142, %148 : vector<64x8xf32>
    %c0_155 = arith.constant 0 : index
    %c0_156 = arith.constant 0 : index
    %150 = vector.load %arg5[%c0_155, %c0_156] : memref<1x8xf32, #tpu.memory_space<vmem>>, vector<1x8xf32>
    %151 = vector.broadcast %150 : vector<1x8xf32> to vector<64x8xf32>
    %152 = arith.addf %149, %151 : vector<64x8xf32>
    %153 = arith.truncf %35 : vector<64x4xf32> to vector<64x4xbf16>
    %c0_157 = arith.constant 0 : index
    %c0_158 = arith.constant 0 : index
    %154 = vector.load %arg6[%c0_157, %c0_158] : memref<4x8xbf16, #tpu.memory_space<vmem>>, vector<4x8xbf16>
    %cst_159 = arith.constant dense<0.000000e+00> : vector<64x8xf32>
    %155 = tpu.matmul %153, %154, %cst_159 {dimension_numbers = #tpu.dot_dimension_numbers<[1], [0], [0], [1], [0, 0, 1, 1], [], []>} : vector<64x4xbf16>, vector<4x8xbf16>, vector<64x8xf32> -> vector<64x8xf32>
    %c0_160 = arith.constant 0 : index
    %c0_161 = arith.constant 0 : index
    %156 = vector.load %arg7[%c0_160, %c0_161] : memref<1x8xf32, #tpu.memory_space<vmem>>, vector<1x8xf32>
    %157 = vector.broadcast %156 : vector<1x8xf32> to vector<64x8xf32>
    %158 = arith.addf %155, %157 : vector<64x8xf32>
    %159 = arith.addf %152, %158 : vector<64x8xf32>
    %cst_162 = arith.constant 0.000000e+00 : f32
    %160 = vector.broadcast %cst_162 : f32 to vector<64x8xf32>
    %161 = arith.maximumf %159, %160 : vector<64x8xf32>
    %162 = vector.shape_cast %161 : vector<64x8xf32> to vector<8x64xf32>
    %c0_163 = arith.constant 0 : index
    %c0_164 = arith.constant 0 : index
    %c0_165 = arith.constant 0 : index
    %163 = vector.load %arg8[%c0_163, %c0_164, %c0_165] : memref<1x8x64xf32, #tpu.memory_space<vmem>>, vector<1x8x64xf32>
    %164 = vector.shape_cast %163 : vector<1x8x64xf32> to vector<8x64xf32>
    %165 = vector.shape_cast %162 : vector<8x64xf32> to vector<1x8x64xf32>
    tpu.vector_store %arg8[%c0_163, %c0_164, %c0_165], %165 {strides = array<i32>} : memref<1x8x64xf32, #tpu.memory_space<vmem>>, vector<1x8x64xf32>,
    return
  }
  func.func @transform_0(%arg0: i32) -> (i32, i32, i32, i32, i32) {
    %c0_i32 = arith.constant 0 : i32
    %c0_i32_0 = arith.constant 0 : i32
    %c0_i32_1 = arith.constant 0 : i32
    %c0_i32_2 = arith.constant 0 : i32
    %c0_i32_3 = arith.constant 0 : i32
    return %arg0, %c0_i32, %c0_i32_0, %c0_i32_1, %c0_i32_2 : i32, i32, i32, i32, i32
  }
  func.func @transform_1(%arg0: i32) -> (i32, i32, i32) {
    %c0_i32 = arith.constant 0 : i32
    %c0_i32_0 = arith.constant 0 : i32
    %c0_i32_1 = arith.constant 0 : i32
    %c0_i32_2 = arith.constant 0 : i32
    return %c0_i32, %c0_i32_0, %c0_i32_1 : i32, i32, i32
  }
  func.func @transform_2(%arg0: i32) -> (i32, i32) {
    %c0_i32 = arith.constant 0 : i32
    %c0_i32_0 = arith.constant 0 : i32
    %c0_i32_1 = arith.constant 0 : i32
    return %c0_i32, %c0_i32_0 : i32, i32
  }
  func.func @transform_3(%arg0: i32) -> (i32, i32, i32) {
    %c0_i32 = arith.constant 0 : i32
    %c0_i32_0 = arith.constant 0 : i32
    %c0_i32_1 = arith.constant 0 : i32
    %c0_i32_2 = arith.constant 0 : i32
    return %c0_i32, %c0_i32_0, %c0_i32_1 : i32, i32, i32
  }
  func.func @transform_4(%arg0: i32) -> (i32, i32) {
    %c0_i32 = arith.constant 0 : i32
    %c0_i32_0 = arith.constant 0 : i32
    %c0_i32_1 = arith.constant 0 : i32
    return %c0_i32, %c0_i32_0 : i32, i32
  }
  func.func @transform_5(%arg0: i32) -> (i32, i32) {
    %c0_i32 = arith.constant 0 : i32
    %c0_i32_0 = arith.constant 0 : i32
    %c0_i32_1 = arith.constant 0 : i32
    return %c0_i32, %c0_i32_0 : i32, i32
  }
  func.func @transform_6(%arg0: i32) -> (i32, i32) {
    %c0_i32 = arith.constant 0 : i32
    %c0_i32_0 = arith.constant 0 : i32
    %c0_i32_1 = arith.constant 0 : i32
    return %c0_i32, %c0_i32_0 : i32, i32
  }
  func.func @transform_7(%arg0: i32) -> (i32, i32, i32) {
    %c0_i32 = arith.constant 0 : i32
    %c0_i32_0 = arith.constant 0 : i32
    %c0_i32_1 = arith.constant 0 : i32
    return %arg0, %c0_i32, %c0_i32_0 : i32, i32, i32
  }
}

module attributes {stable_mosaic.version = 11 : i64} {
  func.func @_basic_block_kernel(%arg0: i32, %arg1: memref<1x4x9x9x4xf32, #tpu.memory_space<vmem>>, %arg2: memref<9x4x8xbf16, #tpu.memory_space<vmem>>, %arg3: memref<1x8xf32, #tpu.memory_space<vmem>>, %arg4: memref<9x8x8xbf16, #tpu.memory_space<vmem>>, %arg5: memref<1x8xf32, #tpu.memory_space<vmem>>, %arg6: memref<4x8xbf16, #tpu.memory_space<vmem>>, %arg7: memref<1x8xf32, #tpu.memory_space<vmem>>, %arg8: memref<1x8x64xf32, #tpu.memory_space<vmem>>, %arg9: memref<10x10x8xf32, #tpu.memory_space<vmem>>) attributes {dimension_semantics = [#tpu.dimension_semantics<parallel>], iteration_bounds = array<i64: 2>, scalar_prefetch = 0 : i64, scratch_operands = 1 : i64, tpu.core_type = #tpu.core_type<tc>, window_params = [{transform_indices = @transform_0, window_bounds = array<i64: 1, 4, 9, 9, 4>}, {pipeline_mode = #tpu.pipeline_mode<synchronous>, transform_indices = @transform_1, window_bounds = array<i64: 9, 4, 8>}, {pipeline_mode = #tpu.pipeline_mode<synchronous>, transform_indices = @transform_2, window_bounds = array<i64: 1, 8>}, {pipeline_mode = #tpu.pipeline_mode<synchronous>, transform_indices = @transform_3, window_bounds = array<i64: 9, 8, 8>}, {pipeline_mode = #tpu.pipeline_mode<synchronous>, transform_indices = @transform_4, window_bounds = array<i64: 1, 8>}, {pipeline_mode = #tpu.pipeline_mode<synchronous>, transform_indices = @transform_5, window_bounds = array<i64: 4, 8>}, {pipeline_mode = #tpu.pipeline_mode<synchronous>, transform_indices = @transform_6, window_bounds = array<i64: 1, 8>}, {transform_indices = @transform_7, window_bounds = array<i64: 1, 8, 64>}]} {
    %cst = arith.constant 0.000000e+00 : f32
    %0 = vector.broadcast %cst : f32 to vector<64x8xf32>
    %c0 = arith.constant 0 : index
    %c0_0 = arith.constant 0 : index
    %c0_1 = arith.constant 0 : index
    %c0_2 = arith.constant 0 : index
    %c0_3 = arith.constant 0 : index
    %1 = vector.load %arg1[%c0, %c0_0, %c0_1, %c0_2, %c0_3] : memref<1x4x9x9x4xf32, #tpu.memory_space<vmem>>, vector<1x1x8x8x4xf32>
    %2 = vector.shape_cast %1 : vector<1x1x8x8x4xf32> to vector<8x8x4xf32>
    %3 = vector.shape_cast %2 : vector<8x8x4xf32> to vector<64x4xf32>
    %4 = arith.truncf %3 : vector<64x4xf32> to vector<64x4xbf16>
    %c0_4 = arith.constant 0 : index
    %c0_5 = arith.constant 0 : index
    %c0_6 = arith.constant 0 : index
    %5 = vector.load %arg2[%c0_4, %c0_5, %c0_6] : memref<9x4x8xbf16, #tpu.memory_space<vmem>>, vector<1x4x8xbf16>
    %6 = vector.shape_cast %5 : vector<1x4x8xbf16> to vector<4x8xbf16>
    %cst_7 = arith.constant dense<0.000000e+00> : vector<64x8xf32>
    %7 = tpu.matmul %4, %6, %cst_7 {dimension_numbers = #tpu.dot_dimension_numbers<[1], [0], [0], [1], [0, 0, 1, 1], [], []>} : vector<64x4xbf16>, vector<4x8xbf16>, vector<64x8xf32> -> vector<64x8xf32>
    %8 = arith.addf %0, %7 : vector<64x8xf32>
    %c0_8 = arith.constant 0 : index
    %c1 = arith.constant 1 : index
    %c0_9 = arith.constant 0 : index
    %c0_10 = arith.constant 0 : index
    %c0_11 = arith.constant 0 : index
    %9 = vector.load %arg1[%c0_8, %c1, %c0_9, %c0_10, %c0_11] : memref<1x4x9x9x4xf32, #tpu.memory_space<vmem>>, vector<1x1x8x8x4xf32>
    %10 = vector.shape_cast %9 : vector<1x1x8x8x4xf32> to vector<8x8x4xf32>
    %11 = vector.shape_cast %10 : vector<8x8x4xf32> to vector<64x4xf32>
    %12 = arith.truncf %11 : vector<64x4xf32> to vector<64x4xbf16>
    %c1_12 = arith.constant 1 : index
    %c0_13 = arith.constant 0 : index
    %c0_14 = arith.constant 0 : index
    %13 = vector.load %arg2[%c1_12, %c0_13, %c0_14] : memref<9x4x8xbf16, #tpu.memory_space<vmem>>, vector<1x4x8xbf16>
    %14 = vector.shape_cast %13 : vector<1x4x8xbf16> to vector<4x8xbf16>
    %cst_15 = arith.constant dense<0.000000e+00> : vector<64x8xf32>
    %15 = tpu.matmul %12, %14, %cst_15 {dimension_numbers = #tpu.dot_dimension_numbers<[1], [0], [0], [1], [0, 0, 1, 1], [], []>} : vector<64x4xbf16>, vector<4x8xbf16>, vector<64x8xf32> -> vector<64x8xf32>
    %16 = arith.addf %8, %15 : vector<64x8xf32>
    %c0_16 = arith.constant 0 : index
    %c0_17 = arith.constant 0 : index
    %c0_18 = arith.constant 0 : index
    %c1_19 = arith.constant 1 : index
    %c0_20 = arith.constant 0 : index
    %17 = vector.load %arg1[%c0_16, %c0_17, %c0_18, %c1_19, %c0_20] : memref<1x4x9x9x4xf32, #tpu.memory_space<vmem>>, vector<1x1x8x8x4xf32>
    %18 = vector.shape_cast %17 : vector<1x1x8x8x4xf32> to vector<8x8x4xf32>
    %19 = vector.shape_cast %18 : vector<8x8x4xf32> to vector<64x4xf32>
    %20 = arith.truncf %19 : vector<64x4xf32> to vector<64x4xbf16>
    %c2 = arith.constant 2 : index
    %c0_21 = arith.constant 0 : index
    %c0_22 = arith.constant 0 : index
    %21 = vector.load %arg2[%c2, %c0_21, %c0_22] : memref<9x4x8xbf16, #tpu.memory_space<vmem>>, vector<1x4x8xbf16>
    %22 = vector.shape_cast %21 : vector<1x4x8xbf16> to vector<4x8xbf16>
    %cst_23 = arith.constant dense<0.000000e+00> : vector<64x8xf32>
    %23 = tpu.matmul %20, %22, %cst_23 {dimension_numbers = #tpu.dot_dimension_numbers<[1], [0], [0], [1], [0, 0, 1, 1], [], []>} : vector<64x4xbf16>, vector<4x8xbf16>, vector<64x8xf32> -> vector<64x8xf32>
    %24 = arith.addf %16, %23 : vector<64x8xf32>
    %c0_24 = arith.constant 0 : index
    %c2_25 = arith.constant 2 : index
    %c0_26 = arith.constant 0 : index
    %c0_27 = arith.constant 0 : index
    %c0_28 = arith.constant 0 : index
    %25 = vector.load %arg1[%c0_24, %c2_25, %c0_26, %c0_27, %c0_28] : memref<1x4x9x9x4xf32, #tpu.memory_space<vmem>>, vector<1x1x8x8x4xf32>
    %26 = vector.shape_cast %25 : vector<1x1x8x8x4xf32> to vector<8x8x4xf32>
    %27 = vector.shape_cast %26 : vector<8x8x4xf32> to vector<64x4xf32>
    %28 = arith.truncf %27 : vector<64x4xf32> to vector<64x4xbf16>
    %c3 = arith.constant 3 : index
    %c0_29 = arith.constant 0 : index
    %c0_30 = arith.constant 0 : index
    %29 = vector.load %arg2[%c3, %c0_29, %c0_30] : memref<9x4x8xbf16, #tpu.memory_space<vmem>>, vector<1x4x8xbf16>
    %30 = vector.shape_cast %29 : vector<1x4x8xbf16> to vector<4x8xbf16>
    %cst_31 = arith.constant dense<0.000000e+00> : vector<64x8xf32>
    %31 = tpu.matmul %28, %30, %cst_31 {dimension_numbers = #tpu.dot_dimension_numbers<[1], [0], [0], [1], [0, 0, 1, 1], [], []>} : vector<64x4xbf16>, vector<4x8xbf16>, vector<64x8xf32> -> vector<64x8xf32>
    %32 = arith.addf %24, %31 : vector<64x8xf32>
    %c0_32 = arith.constant 0 : index
    %c3_33 = arith.constant 3 : index
    %c0_34 = arith.constant 0 : index
    %c0_35 = arith.constant 0 : index
    %c0_36 = arith.constant 0 : index
    %33 = vector.load %arg1[%c0_32, %c3_33, %c0_34, %c0_35, %c0_36] : memref<1x4x9x9x4xf32, #tpu.memory_space<vmem>>, vector<1x1x8x8x4xf32>
    %34 = vector.shape_cast %33 : vector<1x1x8x8x4xf32> to vector<8x8x4xf32>
    %35 = vector.shape_cast %34 : vector<8x8x4xf32> to vector<64x4xf32>
    %36 = arith.truncf %35 : vector<64x4xf32> to vector<64x4xbf16>
    %c4 = arith.constant 4 : index
    %c0_37 = arith.constant 0 : index
    %c0_38 = arith.constant 0 : index
    %37 = vector.load %arg2[%c4, %c0_37, %c0_38] : memref<9x4x8xbf16, #tpu.memory_space<vmem>>, vector<1x4x8xbf16>
    %38 = vector.shape_cast %37 : vector<1x4x8xbf16> to vector<4x8xbf16>
    %cst_39 = arith.constant dense<0.000000e+00> : vector<64x8xf32>
    %39 = tpu.matmul %36, %38, %cst_39 {dimension_numbers = #tpu.dot_dimension_numbers<[1], [0], [0], [1], [0, 0, 1, 1], [], []>} : vector<64x4xbf16>, vector<4x8xbf16>, vector<64x8xf32> -> vector<64x8xf32>
    %40 = arith.addf %32, %39 : vector<64x8xf32>
    %c0_40 = arith.constant 0 : index
    %c2_41 = arith.constant 2 : index
    %c0_42 = arith.constant 0 : index
    %c1_43 = arith.constant 1 : index
    %c0_44 = arith.constant 0 : index
    %41 = vector.load %arg1[%c0_40, %c2_41, %c0_42, %c1_43, %c0_44] : memref<1x4x9x9x4xf32, #tpu.memory_space<vmem>>, vector<1x1x8x8x4xf32>
    %42 = vector.shape_cast %41 : vector<1x1x8x8x4xf32> to vector<8x8x4xf32>
    %43 = vector.shape_cast %42 : vector<8x8x4xf32> to vector<64x4xf32>
    %44 = arith.truncf %43 : vector<64x4xf32> to vector<64x4xbf16>
    %c5 = arith.constant 5 : index
    %c0_45 = arith.constant 0 : index
    %c0_46 = arith.constant 0 : index
    %45 = vector.load %arg2[%c5, %c0_45, %c0_46] : memref<9x4x8xbf16, #tpu.memory_space<vmem>>, vector<1x4x8xbf16>
    %46 = vector.shape_cast %45 : vector<1x4x8xbf16> to vector<4x8xbf16>
    %cst_47 = arith.constant dense<0.000000e+00> : vector<64x8xf32>
    %47 = tpu.matmul %44, %46, %cst_47 {dimension_numbers = #tpu.dot_dimension_numbers<[1], [0], [0], [1], [0, 0, 1, 1], [], []>} : vector<64x4xbf16>, vector<4x8xbf16>, vector<64x8xf32> -> vector<64x8xf32>
    %48 = arith.addf %40, %47 : vector<64x8xf32>
    %c0_48 = arith.constant 0 : index
    %c0_49 = arith.constant 0 : index
    %c1_50 = arith.constant 1 : index
    %c0_51 = arith.constant 0 : index
    %c0_52 = arith.constant 0 : index
    %49 = vector.load %arg1[%c0_48, %c0_49, %c1_50, %c0_51, %c0_52] : memref<1x4x9x9x4xf32, #tpu.memory_space<vmem>>, vector<1x1x8x8x4xf32>
    %50 = vector.shape_cast %49 : vector<1x1x8x8x4xf32> to vector<8x8x4xf32>
    %51 = vector.shape_cast %50 : vector<8x8x4xf32> to vector<64x4xf32>
    %52 = arith.truncf %51 : vector<64x4xf32> to vector<64x4xbf16>
    %c6 = arith.constant 6 : index
    %c0_53 = arith.constant 0 : index
    %c0_54 = arith.constant 0 : index
    %53 = vector.load %arg2[%c6, %c0_53, %c0_54] : memref<9x4x8xbf16, #tpu.memory_space<vmem>>, vector<1x4x8xbf16>
    %54 = vector.shape_cast %53 : vector<1x4x8xbf16> to vector<4x8xbf16>
    %cst_55 = arith.constant dense<0.000000e+00> : vector<64x8xf32>
    %55 = tpu.matmul %52, %54, %cst_55 {dimension_numbers = #tpu.dot_dimension_numbers<[1], [0], [0], [1], [0, 0, 1, 1], [], []>} : vector<64x4xbf16>, vector<4x8xbf16>, vector<64x8xf32> -> vector<64x8xf32>
    %56 = arith.addf %48, %55 : vector<64x8xf32>
    %c0_56 = arith.constant 0 : index
    %c1_57 = arith.constant 1 : index
    %c1_58 = arith.constant 1 : index
    %c0_59 = arith.constant 0 : index
    %c0_60 = arith.constant 0 : index
    %57 = vector.load %arg1[%c0_56, %c1_57, %c1_58, %c0_59, %c0_60] : memref<1x4x9x9x4xf32, #tpu.memory_space<vmem>>, vector<1x1x8x8x4xf32>
    %58 = vector.shape_cast %57 : vector<1x1x8x8x4xf32> to vector<8x8x4xf32>
    %59 = vector.shape_cast %58 : vector<8x8x4xf32> to vector<64x4xf32>
    %60 = arith.truncf %59 : vector<64x4xf32> to vector<64x4xbf16>
    %c7 = arith.constant 7 : index
    %c0_61 = arith.constant 0 : index
    %c0_62 = arith.constant 0 : index
    %61 = vector.load %arg2[%c7, %c0_61, %c0_62] : memref<9x4x8xbf16, #tpu.memory_space<vmem>>, vector<1x4x8xbf16>
    %62 = vector.shape_cast %61 : vector<1x4x8xbf16> to vector<4x8xbf16>
    %cst_63 = arith.constant dense<0.000000e+00> : vector<64x8xf32>
    %63 = tpu.matmul %60, %62, %cst_63 {dimension_numbers = #tpu.dot_dimension_numbers<[1], [0], [0], [1], [0, 0, 1, 1], [], []>} : vector<64x4xbf16>, vector<4x8xbf16>, vector<64x8xf32> -> vector<64x8xf32>
    %64 = arith.addf %56, %63 : vector<64x8xf32>
    %c0_64 = arith.constant 0 : index
    %c0_65 = arith.constant 0 : index
    %c1_66 = arith.constant 1 : index
    %c1_67 = arith.constant 1 : index
    %c0_68 = arith.constant 0 : index
    %65 = vector.load %arg1[%c0_64, %c0_65, %c1_66, %c1_67, %c0_68] : memref<1x4x9x9x4xf32, #tpu.memory_space<vmem>>, vector<1x1x8x8x4xf32>
    %66 = vector.shape_cast %65 : vector<1x1x8x8x4xf32> to vector<8x8x4xf32>
    %67 = vector.shape_cast %66 : vector<8x8x4xf32> to vector<64x4xf32>
    %68 = arith.truncf %67 : vector<64x4xf32> to vector<64x4xbf16>
    %c8 = arith.constant 8 : index
    %c0_69 = arith.constant 0 : index
    %c0_70 = arith.constant 0 : index
    %69 = vector.load %arg2[%c8, %c0_69, %c0_70] : memref<9x4x8xbf16, #tpu.memory_space<vmem>>, vector<1x4x8xbf16>
    %70 = vector.shape_cast %69 : vector<1x4x8xbf16> to vector<4x8xbf16>
    %cst_71 = arith.constant dense<0.000000e+00> : vector<64x8xf32>
    %71 = tpu.matmul %68, %70, %cst_71 {dimension_numbers = #tpu.dot_dimension_numbers<[1], [0], [0], [1], [0, 0, 1, 1], [], []>} : vector<64x4xbf16>, vector<4x8xbf16>, vector<64x8xf32> -> vector<64x8xf32>
    %72 = arith.addf %64, %71 : vector<64x8xf32>
    %c0_72 = arith.constant 0 : index
    %c0_73 = arith.constant 0 : index
    %73 = vector.load %arg3[%c0_72, %c0_73] : memref<1x8xf32, #tpu.memory_space<vmem>>, vector<1x8xf32>
    %74 = vector.broadcast %73 : vector<1x8xf32> to vector<64x8xf32>
    %75 = arith.addf %72, %74 : vector<64x8xf32>
    %cst_74 = arith.constant 0.000000e+00 : f32
    %76 = vector.broadcast %cst_74 : f32 to vector<64x8xf32>
    %77 = arith.maximumf %75, %76 : vector<64x8xf32>
    %cst_75 = arith.constant 0.000000e+00 : f32
    %78 = vector.broadcast %cst_75 : f32 to vector<1x10x8xf32>
    %cst_76 = arith.constant 0.000000e+00 : f32
    %79 = vector.broadcast %cst_76 : f32 to vector<8x1x8xf32>
    %c0_77 = arith.constant 0 : index
    %c0_78 = arith.constant 0 : index
    %c0_79 = arith.constant 0 : index
    %80 = vector.load %arg9[%c0_77, %c0_78, %c0_79] : memref<10x10x8xf32, #tpu.memory_space<vmem>>, vector<1x10x8xf32>
    tpu.vector_store %arg9[%c0_77, %c0_78, %c0_79], %78 {strides = array<i32>} : memref<10x10x8xf32, #tpu.memory_space<vmem>>, vector<1x10x8xf32>,
    %c9 = arith.constant 9 : index
    %c0_80 = arith.constant 0 : index
    %c0_81 = arith.constant 0 : index
    %81 = vector.load %arg9[%c9, %c0_80, %c0_81] : memref<10x10x8xf32, #tpu.memory_space<vmem>>, vector<1x10x8xf32>
    tpu.vector_store %arg9[%c9, %c0_80, %c0_81], %78 {strides = array<i32>} : memref<10x10x8xf32, #tpu.memory_space<vmem>>, vector<1x10x8xf32>,
    %c1_82 = arith.constant 1 : index
    %c0_83 = arith.constant 0 : index
    %c0_84 = arith.constant 0 : index
    %82 = vector.load %arg9[%c1_82, %c0_83, %c0_84] : memref<10x10x8xf32, #tpu.memory_space<vmem>>, vector<8x1x8xf32>
    tpu.vector_store %arg9[%c1_82, %c0_83, %c0_84], %79 {strides = array<i32>} : memref<10x10x8xf32, #tpu.memory_space<vmem>>, vector<8x1x8xf32>,
    %c1_85 = arith.constant 1 : index
    %c9_86 = arith.constant 9 : index
    %c0_87 = arith.constant 0 : index
    %83 = vector.load %arg9[%c1_85, %c9_86, %c0_87] : memref<10x10x8xf32, #tpu.memory_space<vmem>>, vector<8x1x8xf32>
    tpu.vector_store %arg9[%c1_85, %c9_86, %c0_87], %79 {strides = array<i32>} : memref<10x10x8xf32, #tpu.memory_space<vmem>>, vector<8x1x8xf32>,
    %84 = vector.shape_cast %77 : vector<64x8xf32> to vector<8x8x8xf32>
    %c1_88 = arith.constant 1 : index
    %c1_89 = arith.constant 1 : index
    %c0_90 = arith.constant 0 : index
    %85 = vector.load %arg9[%c1_88, %c1_89, %c0_90] : memref<10x10x8xf32, #tpu.memory_space<vmem>>, vector<8x8x8xf32>
    tpu.vector_store %arg9[%c1_88, %c1_89, %c0_90], %84 {strides = array<i32>} : memref<10x10x8xf32, #tpu.memory_space<vmem>>, vector<8x8x8xf32>,
    %cst_91 = arith.constant 0.000000e+00 : f32
    %86 = vector.broadcast %cst_91 : f32 to vector<64x8xf32>
    %c0_92 = arith.constant 0 : index
    %c0_93 = arith.constant 0 : index
    %c0_94 = arith.constant 0 : index
    %87 = vector.load %arg9[%c0_92, %c0_93, %c0_94] : memref<10x10x8xf32, #tpu.memory_space<vmem>>, vector<8x8x8xf32>
    %88 = vector.shape_cast %87 : vector<8x8x8xf32> to vector<64x8xf32>
    %89 = arith.truncf %88 : vector<64x8xf32> to vector<64x8xbf16>
    %c0_95 = arith.constant 0 : index
    %c0_96 = arith.constant 0 : index
    %c0_97 = arith.constant 0 : index
    %90 = vector.load %arg4[%c0_95, %c0_96, %c0_97] : memref<9x8x8xbf16, #tpu.memory_space<vmem>>, vector<1x8x8xbf16>
    %91 = vector.shape_cast %90 : vector<1x8x8xbf16> to vector<8x8xbf16>
    %cst_98 = arith.constant dense<0.000000e+00> : vector<64x8xf32>
    %92 = tpu.matmul %89, %91, %cst_98 {dimension_numbers = #tpu.dot_dimension_numbers<[1], [0], [0], [1], [0, 0, 1, 1], [], []>} : vector<64x8xbf16>, vector<8x8xbf16>, vector<64x8xf32> -> vector<64x8xf32>
    %93 = arith.addf %86, %92 : vector<64x8xf32>
    %c0_99 = arith.constant 0 : index
    %c1_100 = arith.constant 1 : index
    %c0_101 = arith.constant 0 : index
    %94 = vector.load %arg9[%c0_99, %c1_100, %c0_101] : memref<10x10x8xf32, #tpu.memory_space<vmem>>, vector<8x8x8xf32>
    %95 = vector.shape_cast %94 : vector<8x8x8xf32> to vector<64x8xf32>
    %96 = arith.truncf %95 : vector<64x8xf32> to vector<64x8xbf16>
    %c1_102 = arith.constant 1 : index
    %c0_103 = arith.constant 0 : index
    %c0_104 = arith.constant 0 : index
    %97 = vector.load %arg4[%c1_102, %c0_103, %c0_104] : memref<9x8x8xbf16, #tpu.memory_space<vmem>>, vector<1x8x8xbf16>
    %98 = vector.shape_cast %97 : vector<1x8x8xbf16> to vector<8x8xbf16>
    %cst_105 = arith.constant dense<0.000000e+00> : vector<64x8xf32>
    %99 = tpu.matmul %96, %98, %cst_105 {dimension_numbers = #tpu.dot_dimension_numbers<[1], [0], [0], [1], [0, 0, 1, 1], [], []>} : vector<64x8xbf16>, vector<8x8xbf16>, vector<64x8xf32> -> vector<64x8xf32>
    %100 = arith.addf %93, %99 : vector<64x8xf32>
    %c0_106 = arith.constant 0 : index
    %c2_107 = arith.constant 2 : index
    %c0_108 = arith.constant 0 : index
    %101 = vector.load %arg9[%c0_106, %c2_107, %c0_108] : memref<10x10x8xf32, #tpu.memory_space<vmem>>, vector<8x8x8xf32>
    %102 = vector.shape_cast %101 : vector<8x8x8xf32> to vector<64x8xf32>
    %103 = arith.truncf %102 : vector<64x8xf32> to vector<64x8xbf16>
    %c2_109 = arith.constant 2 : index
    %c0_110 = arith.constant 0 : index
    %c0_111 = arith.constant 0 : index
    %104 = vector.load %arg4[%c2_109, %c0_110, %c0_111] : memref<9x8x8xbf16, #tpu.memory_space<vmem>>, vector<1x8x8xbf16>
    %105 = vector.shape_cast %104 : vector<1x8x8xbf16> to vector<8x8xbf16>
    %cst_112 = arith.constant dense<0.000000e+00> : vector<64x8xf32>
    %106 = tpu.matmul %103, %105, %cst_112 {dimension_numbers = #tpu.dot_dimension_numbers<[1], [0], [0], [1], [0, 0, 1, 1], [], []>} : vector<64x8xbf16>, vector<8x8xbf16>, vector<64x8xf32> -> vector<64x8xf32>
    %107 = arith.addf %100, %106 : vector<64x8xf32>
    %c1_113 = arith.constant 1 : index
    %c0_114 = arith.constant 0 : index
    %c0_115 = arith.constant 0 : index
    %108 = vector.load %arg9[%c1_113, %c0_114, %c0_115] : memref<10x10x8xf32, #tpu.memory_space<vmem>>, vector<8x8x8xf32>
    %109 = vector.shape_cast %108 : vector<8x8x8xf32> to vector<64x8xf32>
    %110 = arith.truncf %109 : vector<64x8xf32> to vector<64x8xbf16>
    %c3_116 = arith.constant 3 : index
    %c0_117 = arith.constant 0 : index
    %c0_118 = arith.constant 0 : index
    %111 = vector.load %arg4[%c3_116, %c0_117, %c0_118] : memref<9x8x8xbf16, #tpu.memory_space<vmem>>, vector<1x8x8xbf16>
    %112 = vector.shape_cast %111 : vector<1x8x8xbf16> to vector<8x8xbf16>
    %cst_119 = arith.constant dense<0.000000e+00> : vector<64x8xf32>
    %113 = tpu.matmul %110, %112, %cst_119 {dimension_numbers = #tpu.dot_dimension_numbers<[1], [0], [0], [1], [0, 0, 1, 1], [], []>} : vector<64x8xbf16>, vector<8x8xbf16>, vector<64x8xf32> -> vector<64x8xf32>
    %114 = arith.addf %107, %113 : vector<64x8xf32>
    %c1_120 = arith.constant 1 : index
    %c1_121 = arith.constant 1 : index
    %c0_122 = arith.constant 0 : index
    %115 = vector.load %arg9[%c1_120, %c1_121, %c0_122] : memref<10x10x8xf32, #tpu.memory_space<vmem>>, vector<8x8x8xf32>
    %116 = vector.shape_cast %115 : vector<8x8x8xf32> to vector<64x8xf32>
    %117 = arith.truncf %116 : vector<64x8xf32> to vector<64x8xbf16>
    %c4_123 = arith.constant 4 : index
    %c0_124 = arith.constant 0 : index
    %c0_125 = arith.constant 0 : index
    %118 = vector.load %arg4[%c4_123, %c0_124, %c0_125] : memref<9x8x8xbf16, #tpu.memory_space<vmem>>, vector<1x8x8xbf16>
    %119 = vector.shape_cast %118 : vector<1x8x8xbf16> to vector<8x8xbf16>
    %cst_126 = arith.constant dense<0.000000e+00> : vector<64x8xf32>
    %120 = tpu.matmul %117, %119, %cst_126 {dimension_numbers = #tpu.dot_dimension_numbers<[1], [0], [0], [1], [0, 0, 1, 1], [], []>} : vector<64x8xbf16>, vector<8x8xbf16>, vector<64x8xf32> -> vector<64x8xf32>
    %121 = arith.addf %114, %120 : vector<64x8xf32>
    %c1_127 = arith.constant 1 : index
    %c2_128 = arith.constant 2 : index
    %c0_129 = arith.constant 0 : index
    %122 = vector.load %arg9[%c1_127, %c2_128, %c0_129] : memref<10x10x8xf32, #tpu.memory_space<vmem>>, vector<8x8x8xf32>
    %123 = vector.shape_cast %122 : vector<8x8x8xf32> to vector<64x8xf32>
    %124 = arith.truncf %123 : vector<64x8xf32> to vector<64x8xbf16>
    %c5_130 = arith.constant 5 : index
    %c0_131 = arith.constant 0 : index
    %c0_132 = arith.constant 0 : index
    %125 = vector.load %arg4[%c5_130, %c0_131, %c0_132] : memref<9x8x8xbf16, #tpu.memory_space<vmem>>, vector<1x8x8xbf16>
    %126 = vector.shape_cast %125 : vector<1x8x8xbf16> to vector<8x8xbf16>
    %cst_133 = arith.constant dense<0.000000e+00> : vector<64x8xf32>
    %127 = tpu.matmul %124, %126, %cst_133 {dimension_numbers = #tpu.dot_dimension_numbers<[1], [0], [0], [1], [0, 0, 1, 1], [], []>} : vector<64x8xbf16>, vector<8x8xbf16>, vector<64x8xf32> -> vector<64x8xf32>
    %128 = arith.addf %121, %127 : vector<64x8xf32>
    %c2_134 = arith.constant 2 : index
    %c0_135 = arith.constant 0 : index
    %c0_136 = arith.constant 0 : index
    %129 = vector.load %arg9[%c2_134, %c0_135, %c0_136] : memref<10x10x8xf32, #tpu.memory_space<vmem>>, vector<8x8x8xf32>
    %130 = vector.shape_cast %129 : vector<8x8x8xf32> to vector<64x8xf32>
    %131 = arith.truncf %130 : vector<64x8xf32> to vector<64x8xbf16>
    %c6_137 = arith.constant 6 : index
    %c0_138 = arith.constant 0 : index
    %c0_139 = arith.constant 0 : index
    %132 = vector.load %arg4[%c6_137, %c0_138, %c0_139] : memref<9x8x8xbf16, #tpu.memory_space<vmem>>, vector<1x8x8xbf16>
    %133 = vector.shape_cast %132 : vector<1x8x8xbf16> to vector<8x8xbf16>
    %cst_140 = arith.constant dense<0.000000e+00> : vector<64x8xf32>
    %134 = tpu.matmul %131, %133, %cst_140 {dimension_numbers = #tpu.dot_dimension_numbers<[1], [0], [0], [1], [0, 0, 1, 1], [], []>} : vector<64x8xbf16>, vector<8x8xbf16>, vector<64x8xf32> -> vector<64x8xf32>
    %135 = arith.addf %128, %134 : vector<64x8xf32>
    %c2_141 = arith.constant 2 : index
    %c1_142 = arith.constant 1 : index
    %c0_143 = arith.constant 0 : index
    %136 = vector.load %arg9[%c2_141, %c1_142, %c0_143] : memref<10x10x8xf32, #tpu.memory_space<vmem>>, vector<8x8x8xf32>
    %137 = vector.shape_cast %136 : vector<8x8x8xf32> to vector<64x8xf32>
    %138 = arith.truncf %137 : vector<64x8xf32> to vector<64x8xbf16>
    %c7_144 = arith.constant 7 : index
    %c0_145 = arith.constant 0 : index
    %c0_146 = arith.constant 0 : index
    %139 = vector.load %arg4[%c7_144, %c0_145, %c0_146] : memref<9x8x8xbf16, #tpu.memory_space<vmem>>, vector<1x8x8xbf16>
    %140 = vector.shape_cast %139 : vector<1x8x8xbf16> to vector<8x8xbf16>
    %cst_147 = arith.constant dense<0.000000e+00> : vector<64x8xf32>
    %141 = tpu.matmul %138, %140, %cst_147 {dimension_numbers = #tpu.dot_dimension_numbers<[1], [0], [0], [1], [0, 0, 1, 1], [], []>} : vector<64x8xbf16>, vector<8x8xbf16>, vector<64x8xf32> -> vector<64x8xf32>
    %142 = arith.addf %135, %141 : vector<64x8xf32>
    %c2_148 = arith.constant 2 : index
    %c2_149 = arith.constant 2 : index
    %c0_150 = arith.constant 0 : index
    %143 = vector.load %arg9[%c2_148, %c2_149, %c0_150] : memref<10x10x8xf32, #tpu.memory_space<vmem>>, vector<8x8x8xf32>
    %144 = vector.shape_cast %143 : vector<8x8x8xf32> to vector<64x8xf32>
    %145 = arith.truncf %144 : vector<64x8xf32> to vector<64x8xbf16>
    %c8_151 = arith.constant 8 : index
    %c0_152 = arith.constant 0 : index
    %c0_153 = arith.constant 0 : index
    %146 = vector.load %arg4[%c8_151, %c0_152, %c0_153] : memref<9x8x8xbf16, #tpu.memory_space<vmem>>, vector<1x8x8xbf16>
    %147 = vector.shape_cast %146 : vector<1x8x8xbf16> to vector<8x8xbf16>
    %cst_154 = arith.constant dense<0.000000e+00> : vector<64x8xf32>
    %148 = tpu.matmul %145, %147, %cst_154 {dimension_numbers = #tpu.dot_dimension_numbers<[1], [0], [0], [1], [0, 0, 1, 1], [], []>} : vector<64x8xbf16>, vector<8x8xbf16>, vector<64x8xf32> -> vector<64x8xf32>
    %149 = arith.addf %142, %148 : vector<64x8xf32>
    %c0_155 = arith.constant 0 : index
    %c0_156 = arith.constant 0 : index
    %150 = vector.load %arg5[%c0_155, %c0_156] : memref<1x8xf32, #tpu.memory_space<vmem>>, vector<1x8xf32>
    %151 = vector.broadcast %150 : vector<1x8xf32> to vector<64x8xf32>
    %152 = arith.addf %149, %151 : vector<64x8xf32>
    %153 = arith.truncf %35 : vector<64x4xf32> to vector<64x4xbf16>
    %c0_157 = arith.constant 0 : index
    %c0_158 = arith.constant 0 : index
    %154 = vector.load %arg6[%c0_157, %c0_158] : memref<4x8xbf16, #tpu.memory_space<vmem>>, vector<4x8xbf16>
    %cst_159 = arith.constant dense<0.000000e+00> : vector<64x8xf32>
    %155 = tpu.matmul %153, %154, %cst_159 {dimension_numbers = #tpu.dot_dimension_numbers<[1], [0], [0], [1], [0, 0, 1, 1], [], []>} : vector<64x4xbf16>, vector<4x8xbf16>, vector<64x8xf32> -> vector<64x8xf32>
    %c0_160 = arith.constant 0 : index
    %c0_161 = arith.constant 0 : index
    %156 = vector.load %arg7[%c0_160, %c0_161] : memref<1x8xf32, #tpu.memory_space<vmem>>, vector<1x8xf32>
    %157 = vector.broadcast %156 : vector<1x8xf32> to vector<64x8xf32>
    %158 = arith.addf %155, %157 : vector<64x8xf32>
    %159 = arith.addf %152, %158 : vector<64x8xf32>
    %cst_162 = arith.constant 0.000000e+00 : f32
    %160 = vector.broadcast %cst_162 : f32 to vector<64x8xf32>
    %161 = arith.maximumf %159, %160 : vector<64x8xf32>
    %162 = vector.shape_cast %161 : vector<64x8xf32> to vector<8x64xf32>
    %c0_163 = arith.constant 0 : index
    %c0_164 = arith.constant 0 : index
    %c0_165 = arith.constant 0 : index
    %163 = vector.load %arg8[%c0_163, %c0_164, %c0_165] : memref<1x8x64xf32, #tpu.memory_space<vmem>>, vector<1x8x64xf32>
    %164 = vector.shape_cast %163 : vector<1x8x64xf32> to vector<8x64xf32>
    %165 = vector.shape_cast %162 : vector<8x64xf32> to vector<1x8x64xf32>
    tpu.vector_store %arg8[%c0_163, %c0_164, %c0_165], %165 {strides = array<i32>} : memref<1x8x64xf32, #tpu.memory_space<vmem>>, vector<1x8x64xf32>,
    return
  }
  func.func @transform_0(%arg0: i32) -> (i32, i32, i32, i32, i32) {
    %c0_i32 = arith.constant 0 : i32
    %c0_i32_0 = arith.constant 0 : i32
    %c0_i32_1 = arith.constant 0 : i32
    %c0_i32_2 = arith.constant 0 : i32
    %c0_i32_3 = arith.constant 0 : i32
    return %arg0, %c0_i32, %c0_i32_0, %c0_i32_1, %c0_i32_2 : i32, i32, i32, i32, i32
  }
  func.func @transform_1(%arg0: i32) -> (i32, i32, i32) {
    %c0_i32 = arith.constant 0 : i32
    %c0_i32_0 = arith.constant 0 : i32
    %c0_i32_1 = arith.constant 0 : i32
    %c0_i32_2 = arith.constant 0 : i32
    return %c0_i32, %c0_i32_0, %c0_i32_1 : i32, i32, i32
  }
  func.func @transform_2(%arg0: i32) -> (i32, i32) {
    %c0_i32 = arith.constant 0 : i32
    %c0_i32_0 = arith.constant 0 : i32
    %c0_i32_1 = arith.constant 0 : i32
    return %c0_i32, %c0_i32_0 : i32, i32
  }
  func.func @transform_3(%arg0: i32) -> (i32, i32, i32) {
    %c0_i32 = arith.constant 0 : i32
    %c0_i32_0 = arith.constant 0 : i32
    %c0_i32_1 = arith.constant 0 : i32
    %c0_i32_2 = arith.constant 0 : i32
    return %c0_i32, %c0_i32_0, %c0_i32_1 : i32, i32, i32
  }
  func.func @transform_4(%arg0: i32) -> (i32, i32) {
    %c0_i32 = arith.constant 0 : i32
    %c0_i32_0 = arith.constant 0 : i32
    %c0_i32_1 = arith.constant 0 : i32
    return %c0_i32, %c0_i32_0 : i32, i32
  }
  func.func @transform_5(%arg0: i32) -> (i32, i32) {
    %c0_i32 = arith.constant 0 : i32
    %c0_i32_0 = arith.constant 0 : i32
    %c0_i32_1 = arith.constant 0 : i32
    return %c0_i32, %c0_i32_0 : i32, i32
  }
  func.func @transform_6(%arg0: i32) -> (i32, i32) {
    %c0_i32 = arith.constant 0 : i32
    %c0_i32_0 = arith.constant 0 : i32
    %c0_i32_1 = arith.constant 0 : i32
    return %c0_i32, %c0_i32_0 : i32, i32
  }
  func.func @transform_7(%arg0: i32) -> (i32, i32, i32) {
    %c0_i32 = arith.constant 0 : i32
    %c0_i32_0 = arith.constant 0 : i32
    %c0_i32_1 = arith.constant 0 : i32
    return %arg0, %c0_i32, %c0_i32_0 : i32, i32, i32
  }
}

module attributes {stable_mosaic.version = 11 : i64} {
  func.func @_basic_block_kernel(%arg0: i32, %arg1: memref<1x4x9x9x4xf32, #tpu.memory_space<vmem>>, %arg2: memref<9x4x8xbf16, #tpu.memory_space<vmem>>, %arg3: memref<1x8xf32, #tpu.memory_space<vmem>>, %arg4: memref<9x8x8xbf16, #tpu.memory_space<vmem>>, %arg5: memref<1x8xf32, #tpu.memory_space<vmem>>, %arg6: memref<4x8xbf16, #tpu.memory_space<vmem>>, %arg7: memref<1x8xf32, #tpu.memory_space<vmem>>, %arg8: memref<1x8x8x8xf32, #tpu.memory_space<vmem>>, %arg9: memref<10x10x8xf32, #tpu.memory_space<vmem>>) attributes {dimension_semantics = [#tpu.dimension_semantics<parallel>], iteration_bounds = array<i64: 2>, scalar_prefetch = 0 : i64, scratch_operands = 1 : i64, tpu.core_type = #tpu.core_type<tc>, window_params = [{transform_indices = @transform_0, window_bounds = array<i64: 1, 4, 9, 9, 4>}, {pipeline_mode = #tpu.pipeline_mode<synchronous>, transform_indices = @transform_1, window_bounds = array<i64: 9, 4, 8>}, {pipeline_mode = #tpu.pipeline_mode<synchronous>, transform_indices = @transform_2, window_bounds = array<i64: 1, 8>}, {pipeline_mode = #tpu.pipeline_mode<synchronous>, transform_indices = @transform_3, window_bounds = array<i64: 9, 8, 8>}, {pipeline_mode = #tpu.pipeline_mode<synchronous>, transform_indices = @transform_4, window_bounds = array<i64: 1, 8>}, {pipeline_mode = #tpu.pipeline_mode<synchronous>, transform_indices = @transform_5, window_bounds = array<i64: 4, 8>}, {pipeline_mode = #tpu.pipeline_mode<synchronous>, transform_indices = @transform_6, window_bounds = array<i64: 1, 8>}, {transform_indices = @transform_7, window_bounds = array<i64: 1, 8, 8, 8>}]} {
    %cst = arith.constant 0.000000e+00 : f32
    %0 = vector.broadcast %cst : f32 to vector<64x8xf32>
    %c0 = arith.constant 0 : index
    %c0_0 = arith.constant 0 : index
    %c0_1 = arith.constant 0 : index
    %c0_2 = arith.constant 0 : index
    %c0_3 = arith.constant 0 : index
    %1 = vector.load %arg1[%c0, %c0_0, %c0_1, %c0_2, %c0_3] : memref<1x4x9x9x4xf32, #tpu.memory_space<vmem>>, vector<1x1x8x8x4xf32>
    %2 = vector.shape_cast %1 : vector<1x1x8x8x4xf32> to vector<8x8x4xf32>
    %3 = vector.shape_cast %2 : vector<8x8x4xf32> to vector<64x4xf32>
    %4 = arith.truncf %3 : vector<64x4xf32> to vector<64x4xbf16>
    %c0_4 = arith.constant 0 : index
    %c0_5 = arith.constant 0 : index
    %c0_6 = arith.constant 0 : index
    %5 = vector.load %arg2[%c0_4, %c0_5, %c0_6] : memref<9x4x8xbf16, #tpu.memory_space<vmem>>, vector<1x4x8xbf16>
    %6 = vector.shape_cast %5 : vector<1x4x8xbf16> to vector<4x8xbf16>
    %cst_7 = arith.constant dense<0.000000e+00> : vector<64x8xf32>
    %7 = tpu.matmul %4, %6, %cst_7 {dimension_numbers = #tpu.dot_dimension_numbers<[1], [0], [0], [1], [0, 0, 1, 1], [], []>} : vector<64x4xbf16>, vector<4x8xbf16>, vector<64x8xf32> -> vector<64x8xf32>
    %8 = arith.addf %0, %7 : vector<64x8xf32>
    %c0_8 = arith.constant 0 : index
    %c1 = arith.constant 1 : index
    %c0_9 = arith.constant 0 : index
    %c0_10 = arith.constant 0 : index
    %c0_11 = arith.constant 0 : index
    %9 = vector.load %arg1[%c0_8, %c1, %c0_9, %c0_10, %c0_11] : memref<1x4x9x9x4xf32, #tpu.memory_space<vmem>>, vector<1x1x8x8x4xf32>
    %10 = vector.shape_cast %9 : vector<1x1x8x8x4xf32> to vector<8x8x4xf32>
    %11 = vector.shape_cast %10 : vector<8x8x4xf32> to vector<64x4xf32>
    %12 = arith.truncf %11 : vector<64x4xf32> to vector<64x4xbf16>
    %c1_12 = arith.constant 1 : index
    %c0_13 = arith.constant 0 : index
    %c0_14 = arith.constant 0 : index
    %13 = vector.load %arg2[%c1_12, %c0_13, %c0_14] : memref<9x4x8xbf16, #tpu.memory_space<vmem>>, vector<1x4x8xbf16>
    %14 = vector.shape_cast %13 : vector<1x4x8xbf16> to vector<4x8xbf16>
    %cst_15 = arith.constant dense<0.000000e+00> : vector<64x8xf32>
    %15 = tpu.matmul %12, %14, %cst_15 {dimension_numbers = #tpu.dot_dimension_numbers<[1], [0], [0], [1], [0, 0, 1, 1], [], []>} : vector<64x4xbf16>, vector<4x8xbf16>, vector<64x8xf32> -> vector<64x8xf32>
    %16 = arith.addf %8, %15 : vector<64x8xf32>
    %c0_16 = arith.constant 0 : index
    %c0_17 = arith.constant 0 : index
    %c0_18 = arith.constant 0 : index
    %c1_19 = arith.constant 1 : index
    %c0_20 = arith.constant 0 : index
    %17 = vector.load %arg1[%c0_16, %c0_17, %c0_18, %c1_19, %c0_20] : memref<1x4x9x9x4xf32, #tpu.memory_space<vmem>>, vector<1x1x8x8x4xf32>
    %18 = vector.shape_cast %17 : vector<1x1x8x8x4xf32> to vector<8x8x4xf32>
    %19 = vector.shape_cast %18 : vector<8x8x4xf32> to vector<64x4xf32>
    %20 = arith.truncf %19 : vector<64x4xf32> to vector<64x4xbf16>
    %c2 = arith.constant 2 : index
    %c0_21 = arith.constant 0 : index
    %c0_22 = arith.constant 0 : index
    %21 = vector.load %arg2[%c2, %c0_21, %c0_22] : memref<9x4x8xbf16, #tpu.memory_space<vmem>>, vector<1x4x8xbf16>
    %22 = vector.shape_cast %21 : vector<1x4x8xbf16> to vector<4x8xbf16>
    %cst_23 = arith.constant dense<0.000000e+00> : vector<64x8xf32>
    %23 = tpu.matmul %20, %22, %cst_23 {dimension_numbers = #tpu.dot_dimension_numbers<[1], [0], [0], [1], [0, 0, 1, 1], [], []>} : vector<64x4xbf16>, vector<4x8xbf16>, vector<64x8xf32> -> vector<64x8xf32>
    %24 = arith.addf %16, %23 : vector<64x8xf32>
    %c0_24 = arith.constant 0 : index
    %c2_25 = arith.constant 2 : index
    %c0_26 = arith.constant 0 : index
    %c0_27 = arith.constant 0 : index
    %c0_28 = arith.constant 0 : index
    %25 = vector.load %arg1[%c0_24, %c2_25, %c0_26, %c0_27, %c0_28] : memref<1x4x9x9x4xf32, #tpu.memory_space<vmem>>, vector<1x1x8x8x4xf32>
    %26 = vector.shape_cast %25 : vector<1x1x8x8x4xf32> to vector<8x8x4xf32>
    %27 = vector.shape_cast %26 : vector<8x8x4xf32> to vector<64x4xf32>
    %28 = arith.truncf %27 : vector<64x4xf32> to vector<64x4xbf16>
    %c3 = arith.constant 3 : index
    %c0_29 = arith.constant 0 : index
    %c0_30 = arith.constant 0 : index
    %29 = vector.load %arg2[%c3, %c0_29, %c0_30] : memref<9x4x8xbf16, #tpu.memory_space<vmem>>, vector<1x4x8xbf16>
    %30 = vector.shape_cast %29 : vector<1x4x8xbf16> to vector<4x8xbf16>
    %cst_31 = arith.constant dense<0.000000e+00> : vector<64x8xf32>
    %31 = tpu.matmul %28, %30, %cst_31 {dimension_numbers = #tpu.dot_dimension_numbers<[1], [0], [0], [1], [0, 0, 1, 1], [], []>} : vector<64x4xbf16>, vector<4x8xbf16>, vector<64x8xf32> -> vector<64x8xf32>
    %32 = arith.addf %24, %31 : vector<64x8xf32>
    %c0_32 = arith.constant 0 : index
    %c3_33 = arith.constant 3 : index
    %c0_34 = arith.constant 0 : index
    %c0_35 = arith.constant 0 : index
    %c0_36 = arith.constant 0 : index
    %33 = vector.load %arg1[%c0_32, %c3_33, %c0_34, %c0_35, %c0_36] : memref<1x4x9x9x4xf32, #tpu.memory_space<vmem>>, vector<1x1x8x8x4xf32>
    %34 = vector.shape_cast %33 : vector<1x1x8x8x4xf32> to vector<8x8x4xf32>
    %35 = vector.shape_cast %34 : vector<8x8x4xf32> to vector<64x4xf32>
    %36 = arith.truncf %35 : vector<64x4xf32> to vector<64x4xbf16>
    %c4 = arith.constant 4 : index
    %c0_37 = arith.constant 0 : index
    %c0_38 = arith.constant 0 : index
    %37 = vector.load %arg2[%c4, %c0_37, %c0_38] : memref<9x4x8xbf16, #tpu.memory_space<vmem>>, vector<1x4x8xbf16>
    %38 = vector.shape_cast %37 : vector<1x4x8xbf16> to vector<4x8xbf16>
    %cst_39 = arith.constant dense<0.000000e+00> : vector<64x8xf32>
    %39 = tpu.matmul %36, %38, %cst_39 {dimension_numbers = #tpu.dot_dimension_numbers<[1], [0], [0], [1], [0, 0, 1, 1], [], []>} : vector<64x4xbf16>, vector<4x8xbf16>, vector<64x8xf32> -> vector<64x8xf32>
    %40 = arith.addf %32, %39 : vector<64x8xf32>
    %c0_40 = arith.constant 0 : index
    %c2_41 = arith.constant 2 : index
    %c0_42 = arith.constant 0 : index
    %c1_43 = arith.constant 1 : index
    %c0_44 = arith.constant 0 : index
    %41 = vector.load %arg1[%c0_40, %c2_41, %c0_42, %c1_43, %c0_44] : memref<1x4x9x9x4xf32, #tpu.memory_space<vmem>>, vector<1x1x8x8x4xf32>
    %42 = vector.shape_cast %41 : vector<1x1x8x8x4xf32> to vector<8x8x4xf32>
    %43 = vector.shape_cast %42 : vector<8x8x4xf32> to vector<64x4xf32>
    %44 = arith.truncf %43 : vector<64x4xf32> to vector<64x4xbf16>
    %c5 = arith.constant 5 : index
    %c0_45 = arith.constant 0 : index
    %c0_46 = arith.constant 0 : index
    %45 = vector.load %arg2[%c5, %c0_45, %c0_46] : memref<9x4x8xbf16, #tpu.memory_space<vmem>>, vector<1x4x8xbf16>
    %46 = vector.shape_cast %45 : vector<1x4x8xbf16> to vector<4x8xbf16>
    %cst_47 = arith.constant dense<0.000000e+00> : vector<64x8xf32>
    %47 = tpu.matmul %44, %46, %cst_47 {dimension_numbers = #tpu.dot_dimension_numbers<[1], [0], [0], [1], [0, 0, 1, 1], [], []>} : vector<64x4xbf16>, vector<4x8xbf16>, vector<64x8xf32> -> vector<64x8xf32>
    %48 = arith.addf %40, %47 : vector<64x8xf32>
    %c0_48 = arith.constant 0 : index
    %c0_49 = arith.constant 0 : index
    %c1_50 = arith.constant 1 : index
    %c0_51 = arith.constant 0 : index
    %c0_52 = arith.constant 0 : index
    %49 = vector.load %arg1[%c0_48, %c0_49, %c1_50, %c0_51, %c0_52] : memref<1x4x9x9x4xf32, #tpu.memory_space<vmem>>, vector<1x1x8x8x4xf32>
    %50 = vector.shape_cast %49 : vector<1x1x8x8x4xf32> to vector<8x8x4xf32>
    %51 = vector.shape_cast %50 : vector<8x8x4xf32> to vector<64x4xf32>
    %52 = arith.truncf %51 : vector<64x4xf32> to vector<64x4xbf16>
    %c6 = arith.constant 6 : index
    %c0_53 = arith.constant 0 : index
    %c0_54 = arith.constant 0 : index
    %53 = vector.load %arg2[%c6, %c0_53, %c0_54] : memref<9x4x8xbf16, #tpu.memory_space<vmem>>, vector<1x4x8xbf16>
    %54 = vector.shape_cast %53 : vector<1x4x8xbf16> to vector<4x8xbf16>
    %cst_55 = arith.constant dense<0.000000e+00> : vector<64x8xf32>
    %55 = tpu.matmul %52, %54, %cst_55 {dimension_numbers = #tpu.dot_dimension_numbers<[1], [0], [0], [1], [0, 0, 1, 1], [], []>} : vector<64x4xbf16>, vector<4x8xbf16>, vector<64x8xf32> -> vector<64x8xf32>
    %56 = arith.addf %48, %55 : vector<64x8xf32>
    %c0_56 = arith.constant 0 : index
    %c1_57 = arith.constant 1 : index
    %c1_58 = arith.constant 1 : index
    %c0_59 = arith.constant 0 : index
    %c0_60 = arith.constant 0 : index
    %57 = vector.load %arg1[%c0_56, %c1_57, %c1_58, %c0_59, %c0_60] : memref<1x4x9x9x4xf32, #tpu.memory_space<vmem>>, vector<1x1x8x8x4xf32>
    %58 = vector.shape_cast %57 : vector<1x1x8x8x4xf32> to vector<8x8x4xf32>
    %59 = vector.shape_cast %58 : vector<8x8x4xf32> to vector<64x4xf32>
    %60 = arith.truncf %59 : vector<64x4xf32> to vector<64x4xbf16>
    %c7 = arith.constant 7 : index
    %c0_61 = arith.constant 0 : index
    %c0_62 = arith.constant 0 : index
    %61 = vector.load %arg2[%c7, %c0_61, %c0_62] : memref<9x4x8xbf16, #tpu.memory_space<vmem>>, vector<1x4x8xbf16>
    %62 = vector.shape_cast %61 : vector<1x4x8xbf16> to vector<4x8xbf16>
    %cst_63 = arith.constant dense<0.000000e+00> : vector<64x8xf32>
    %63 = tpu.matmul %60, %62, %cst_63 {dimension_numbers = #tpu.dot_dimension_numbers<[1], [0], [0], [1], [0, 0, 1, 1], [], []>} : vector<64x4xbf16>, vector<4x8xbf16>, vector<64x8xf32> -> vector<64x8xf32>
    %64 = arith.addf %56, %63 : vector<64x8xf32>
    %c0_64 = arith.constant 0 : index
    %c0_65 = arith.constant 0 : index
    %c1_66 = arith.constant 1 : index
    %c1_67 = arith.constant 1 : index
    %c0_68 = arith.constant 0 : index
    %65 = vector.load %arg1[%c0_64, %c0_65, %c1_66, %c1_67, %c0_68] : memref<1x4x9x9x4xf32, #tpu.memory_space<vmem>>, vector<1x1x8x8x4xf32>
    %66 = vector.shape_cast %65 : vector<1x1x8x8x4xf32> to vector<8x8x4xf32>
    %67 = vector.shape_cast %66 : vector<8x8x4xf32> to vector<64x4xf32>
    %68 = arith.truncf %67 : vector<64x4xf32> to vector<64x4xbf16>
    %c8 = arith.constant 8 : index
    %c0_69 = arith.constant 0 : index
    %c0_70 = arith.constant 0 : index
    %69 = vector.load %arg2[%c8, %c0_69, %c0_70] : memref<9x4x8xbf16, #tpu.memory_space<vmem>>, vector<1x4x8xbf16>
    %70 = vector.shape_cast %69 : vector<1x4x8xbf16> to vector<4x8xbf16>
    %cst_71 = arith.constant dense<0.000000e+00> : vector<64x8xf32>
    %71 = tpu.matmul %68, %70, %cst_71 {dimension_numbers = #tpu.dot_dimension_numbers<[1], [0], [0], [1], [0, 0, 1, 1], [], []>} : vector<64x4xbf16>, vector<4x8xbf16>, vector<64x8xf32> -> vector<64x8xf32>
    %72 = arith.addf %64, %71 : vector<64x8xf32>
    %c0_72 = arith.constant 0 : index
    %c0_73 = arith.constant 0 : index
    %73 = vector.load %arg3[%c0_72, %c0_73] : memref<1x8xf32, #tpu.memory_space<vmem>>, vector<1x8xf32>
    %74 = vector.broadcast %73 : vector<1x8xf32> to vector<64x8xf32>
    %75 = arith.addf %72, %74 : vector<64x8xf32>
    %cst_74 = arith.constant 0.000000e+00 : f32
    %76 = vector.broadcast %cst_74 : f32 to vector<64x8xf32>
    %77 = arith.maximumf %75, %76 : vector<64x8xf32>
    %cst_75 = arith.constant 0.000000e+00 : f32
    %78 = vector.broadcast %cst_75 : f32 to vector<1x10x8xf32>
    %cst_76 = arith.constant 0.000000e+00 : f32
    %79 = vector.broadcast %cst_76 : f32 to vector<8x1x8xf32>
    %c0_77 = arith.constant 0 : index
    %c0_78 = arith.constant 0 : index
    %c0_79 = arith.constant 0 : index
    %80 = vector.load %arg9[%c0_77, %c0_78, %c0_79] : memref<10x10x8xf32, #tpu.memory_space<vmem>>, vector<1x10x8xf32>
    tpu.vector_store %arg9[%c0_77, %c0_78, %c0_79], %78 {strides = array<i32>} : memref<10x10x8xf32, #tpu.memory_space<vmem>>, vector<1x10x8xf32>,
    %c9 = arith.constant 9 : index
    %c0_80 = arith.constant 0 : index
    %c0_81 = arith.constant 0 : index
    %81 = vector.load %arg9[%c9, %c0_80, %c0_81] : memref<10x10x8xf32, #tpu.memory_space<vmem>>, vector<1x10x8xf32>
    tpu.vector_store %arg9[%c9, %c0_80, %c0_81], %78 {strides = array<i32>} : memref<10x10x8xf32, #tpu.memory_space<vmem>>, vector<1x10x8xf32>,
    %c1_82 = arith.constant 1 : index
    %c0_83 = arith.constant 0 : index
    %c0_84 = arith.constant 0 : index
    %82 = vector.load %arg9[%c1_82, %c0_83, %c0_84] : memref<10x10x8xf32, #tpu.memory_space<vmem>>, vector<8x1x8xf32>
    tpu.vector_store %arg9[%c1_82, %c0_83, %c0_84], %79 {strides = array<i32>} : memref<10x10x8xf32, #tpu.memory_space<vmem>>, vector<8x1x8xf32>,
    %c1_85 = arith.constant 1 : index
    %c9_86 = arith.constant 9 : index
    %c0_87 = arith.constant 0 : index
    %83 = vector.load %arg9[%c1_85, %c9_86, %c0_87] : memref<10x10x8xf32, #tpu.memory_space<vmem>>, vector<8x1x8xf32>
    tpu.vector_store %arg9[%c1_85, %c9_86, %c0_87], %79 {strides = array<i32>} : memref<10x10x8xf32, #tpu.memory_space<vmem>>, vector<8x1x8xf32>,
    %84 = vector.shape_cast %77 : vector<64x8xf32> to vector<8x8x8xf32>
    %c1_88 = arith.constant 1 : index
    %c1_89 = arith.constant 1 : index
    %c0_90 = arith.constant 0 : index
    %85 = vector.load %arg9[%c1_88, %c1_89, %c0_90] : memref<10x10x8xf32, #tpu.memory_space<vmem>>, vector<8x8x8xf32>
    tpu.vector_store %arg9[%c1_88, %c1_89, %c0_90], %84 {strides = array<i32>} : memref<10x10x8xf32, #tpu.memory_space<vmem>>, vector<8x8x8xf32>,
    %cst_91 = arith.constant 0.000000e+00 : f32
    %86 = vector.broadcast %cst_91 : f32 to vector<64x8xf32>
    %c0_92 = arith.constant 0 : index
    %c0_93 = arith.constant 0 : index
    %c0_94 = arith.constant 0 : index
    %87 = vector.load %arg9[%c0_92, %c0_93, %c0_94] : memref<10x10x8xf32, #tpu.memory_space<vmem>>, vector<8x8x8xf32>
    %88 = vector.shape_cast %87 : vector<8x8x8xf32> to vector<64x8xf32>
    %89 = arith.truncf %88 : vector<64x8xf32> to vector<64x8xbf16>
    %c0_95 = arith.constant 0 : index
    %c0_96 = arith.constant 0 : index
    %c0_97 = arith.constant 0 : index
    %90 = vector.load %arg4[%c0_95, %c0_96, %c0_97] : memref<9x8x8xbf16, #tpu.memory_space<vmem>>, vector<1x8x8xbf16>
    %91 = vector.shape_cast %90 : vector<1x8x8xbf16> to vector<8x8xbf16>
    %cst_98 = arith.constant dense<0.000000e+00> : vector<64x8xf32>
    %92 = tpu.matmul %89, %91, %cst_98 {dimension_numbers = #tpu.dot_dimension_numbers<[1], [0], [0], [1], [0, 0, 1, 1], [], []>} : vector<64x8xbf16>, vector<8x8xbf16>, vector<64x8xf32> -> vector<64x8xf32>
    %93 = arith.addf %86, %92 : vector<64x8xf32>
    %c0_99 = arith.constant 0 : index
    %c1_100 = arith.constant 1 : index
    %c0_101 = arith.constant 0 : index
    %94 = vector.load %arg9[%c0_99, %c1_100, %c0_101] : memref<10x10x8xf32, #tpu.memory_space<vmem>>, vector<8x8x8xf32>
    %95 = vector.shape_cast %94 : vector<8x8x8xf32> to vector<64x8xf32>
    %96 = arith.truncf %95 : vector<64x8xf32> to vector<64x8xbf16>
    %c1_102 = arith.constant 1 : index
    %c0_103 = arith.constant 0 : index
    %c0_104 = arith.constant 0 : index
    %97 = vector.load %arg4[%c1_102, %c0_103, %c0_104] : memref<9x8x8xbf16, #tpu.memory_space<vmem>>, vector<1x8x8xbf16>
    %98 = vector.shape_cast %97 : vector<1x8x8xbf16> to vector<8x8xbf16>
    %cst_105 = arith.constant dense<0.000000e+00> : vector<64x8xf32>
    %99 = tpu.matmul %96, %98, %cst_105 {dimension_numbers = #tpu.dot_dimension_numbers<[1], [0], [0], [1], [0, 0, 1, 1], [], []>} : vector<64x8xbf16>, vector<8x8xbf16>, vector<64x8xf32> -> vector<64x8xf32>
    %100 = arith.addf %93, %99 : vector<64x8xf32>
    %c0_106 = arith.constant 0 : index
    %c2_107 = arith.constant 2 : index
    %c0_108 = arith.constant 0 : index
    %101 = vector.load %arg9[%c0_106, %c2_107, %c0_108] : memref<10x10x8xf32, #tpu.memory_space<vmem>>, vector<8x8x8xf32>
    %102 = vector.shape_cast %101 : vector<8x8x8xf32> to vector<64x8xf32>
    %103 = arith.truncf %102 : vector<64x8xf32> to vector<64x8xbf16>
    %c2_109 = arith.constant 2 : index
    %c0_110 = arith.constant 0 : index
    %c0_111 = arith.constant 0 : index
    %104 = vector.load %arg4[%c2_109, %c0_110, %c0_111] : memref<9x8x8xbf16, #tpu.memory_space<vmem>>, vector<1x8x8xbf16>
    %105 = vector.shape_cast %104 : vector<1x8x8xbf16> to vector<8x8xbf16>
    %cst_112 = arith.constant dense<0.000000e+00> : vector<64x8xf32>
    %106 = tpu.matmul %103, %105, %cst_112 {dimension_numbers = #tpu.dot_dimension_numbers<[1], [0], [0], [1], [0, 0, 1, 1], [], []>} : vector<64x8xbf16>, vector<8x8xbf16>, vector<64x8xf32> -> vector<64x8xf32>
    %107 = arith.addf %100, %106 : vector<64x8xf32>
    %c1_113 = arith.constant 1 : index
    %c0_114 = arith.constant 0 : index
    %c0_115 = arith.constant 0 : index
    %108 = vector.load %arg9[%c1_113, %c0_114, %c0_115] : memref<10x10x8xf32, #tpu.memory_space<vmem>>, vector<8x8x8xf32>
    %109 = vector.shape_cast %108 : vector<8x8x8xf32> to vector<64x8xf32>
    %110 = arith.truncf %109 : vector<64x8xf32> to vector<64x8xbf16>
    %c3_116 = arith.constant 3 : index
    %c0_117 = arith.constant 0 : index
    %c0_118 = arith.constant 0 : index
    %111 = vector.load %arg4[%c3_116, %c0_117, %c0_118] : memref<9x8x8xbf16, #tpu.memory_space<vmem>>, vector<1x8x8xbf16>
    %112 = vector.shape_cast %111 : vector<1x8x8xbf16> to vector<8x8xbf16>
    %cst_119 = arith.constant dense<0.000000e+00> : vector<64x8xf32>
    %113 = tpu.matmul %110, %112, %cst_119 {dimension_numbers = #tpu.dot_dimension_numbers<[1], [0], [0], [1], [0, 0, 1, 1], [], []>} : vector<64x8xbf16>, vector<8x8xbf16>, vector<64x8xf32> -> vector<64x8xf32>
    %114 = arith.addf %107, %113 : vector<64x8xf32>
    %c1_120 = arith.constant 1 : index
    %c1_121 = arith.constant 1 : index
    %c0_122 = arith.constant 0 : index
    %115 = vector.load %arg9[%c1_120, %c1_121, %c0_122] : memref<10x10x8xf32, #tpu.memory_space<vmem>>, vector<8x8x8xf32>
    %116 = vector.shape_cast %115 : vector<8x8x8xf32> to vector<64x8xf32>
    %117 = arith.truncf %116 : vector<64x8xf32> to vector<64x8xbf16>
    %c4_123 = arith.constant 4 : index
    %c0_124 = arith.constant 0 : index
    %c0_125 = arith.constant 0 : index
    %118 = vector.load %arg4[%c4_123, %c0_124, %c0_125] : memref<9x8x8xbf16, #tpu.memory_space<vmem>>, vector<1x8x8xbf16>
    %119 = vector.shape_cast %118 : vector<1x8x8xbf16> to vector<8x8xbf16>
    %cst_126 = arith.constant dense<0.000000e+00> : vector<64x8xf32>
    %120 = tpu.matmul %117, %119, %cst_126 {dimension_numbers = #tpu.dot_dimension_numbers<[1], [0], [0], [1], [0, 0, 1, 1], [], []>} : vector<64x8xbf16>, vector<8x8xbf16>, vector<64x8xf32> -> vector<64x8xf32>
    %121 = arith.addf %114, %120 : vector<64x8xf32>
    %c1_127 = arith.constant 1 : index
    %c2_128 = arith.constant 2 : index
    %c0_129 = arith.constant 0 : index
    %122 = vector.load %arg9[%c1_127, %c2_128, %c0_129] : memref<10x10x8xf32, #tpu.memory_space<vmem>>, vector<8x8x8xf32>
    %123 = vector.shape_cast %122 : vector<8x8x8xf32> to vector<64x8xf32>
    %124 = arith.truncf %123 : vector<64x8xf32> to vector<64x8xbf16>
    %c5_130 = arith.constant 5 : index
    %c0_131 = arith.constant 0 : index
    %c0_132 = arith.constant 0 : index
    %125 = vector.load %arg4[%c5_130, %c0_131, %c0_132] : memref<9x8x8xbf16, #tpu.memory_space<vmem>>, vector<1x8x8xbf16>
    %126 = vector.shape_cast %125 : vector<1x8x8xbf16> to vector<8x8xbf16>
    %cst_133 = arith.constant dense<0.000000e+00> : vector<64x8xf32>
    %127 = tpu.matmul %124, %126, %cst_133 {dimension_numbers = #tpu.dot_dimension_numbers<[1], [0], [0], [1], [0, 0, 1, 1], [], []>} : vector<64x8xbf16>, vector<8x8xbf16>, vector<64x8xf32> -> vector<64x8xf32>
    %128 = arith.addf %121, %127 : vector<64x8xf32>
    %c2_134 = arith.constant 2 : index
    %c0_135 = arith.constant 0 : index
    %c0_136 = arith.constant 0 : index
    %129 = vector.load %arg9[%c2_134, %c0_135, %c0_136] : memref<10x10x8xf32, #tpu.memory_space<vmem>>, vector<8x8x8xf32>
    %130 = vector.shape_cast %129 : vector<8x8x8xf32> to vector<64x8xf32>
    %131 = arith.truncf %130 : vector<64x8xf32> to vector<64x8xbf16>
    %c6_137 = arith.constant 6 : index
    %c0_138 = arith.constant 0 : index
    %c0_139 = arith.constant 0 : index
    %132 = vector.load %arg4[%c6_137, %c0_138, %c0_139] : memref<9x8x8xbf16, #tpu.memory_space<vmem>>, vector<1x8x8xbf16>
    %133 = vector.shape_cast %132 : vector<1x8x8xbf16> to vector<8x8xbf16>
    %cst_140 = arith.constant dense<0.000000e+00> : vector<64x8xf32>
    %134 = tpu.matmul %131, %133, %cst_140 {dimension_numbers = #tpu.dot_dimension_numbers<[1], [0], [0], [1], [0, 0, 1, 1], [], []>} : vector<64x8xbf16>, vector<8x8xbf16>, vector<64x8xf32> -> vector<64x8xf32>
    %135 = arith.addf %128, %134 : vector<64x8xf32>
    %c2_141 = arith.constant 2 : index
    %c1_142 = arith.constant 1 : index
    %c0_143 = arith.constant 0 : index
    %136 = vector.load %arg9[%c2_141, %c1_142, %c0_143] : memref<10x10x8xf32, #tpu.memory_space<vmem>>, vector<8x8x8xf32>
    %137 = vector.shape_cast %136 : vector<8x8x8xf32> to vector<64x8xf32>
    %138 = arith.truncf %137 : vector<64x8xf32> to vector<64x8xbf16>
    %c7_144 = arith.constant 7 : index
    %c0_145 = arith.constant 0 : index
    %c0_146 = arith.constant 0 : index
    %139 = vector.load %arg4[%c7_144, %c0_145, %c0_146] : memref<9x8x8xbf16, #tpu.memory_space<vmem>>, vector<1x8x8xbf16>
    %140 = vector.shape_cast %139 : vector<1x8x8xbf16> to vector<8x8xbf16>
    %cst_147 = arith.constant dense<0.000000e+00> : vector<64x8xf32>
    %141 = tpu.matmul %138, %140, %cst_147 {dimension_numbers = #tpu.dot_dimension_numbers<[1], [0], [0], [1], [0, 0, 1, 1], [], []>} : vector<64x8xbf16>, vector<8x8xbf16>, vector<64x8xf32> -> vector<64x8xf32>
    %142 = arith.addf %135, %141 : vector<64x8xf32>
    %c2_148 = arith.constant 2 : index
    %c2_149 = arith.constant 2 : index
    %c0_150 = arith.constant 0 : index
    %143 = vector.load %arg9[%c2_148, %c2_149, %c0_150] : memref<10x10x8xf32, #tpu.memory_space<vmem>>, vector<8x8x8xf32>
    %144 = vector.shape_cast %143 : vector<8x8x8xf32> to vector<64x8xf32>
    %145 = arith.truncf %144 : vector<64x8xf32> to vector<64x8xbf16>
    %c8_151 = arith.constant 8 : index
    %c0_152 = arith.constant 0 : index
    %c0_153 = arith.constant 0 : index
    %146 = vector.load %arg4[%c8_151, %c0_152, %c0_153] : memref<9x8x8xbf16, #tpu.memory_space<vmem>>, vector<1x8x8xbf16>
    %147 = vector.shape_cast %146 : vector<1x8x8xbf16> to vector<8x8xbf16>
    %cst_154 = arith.constant dense<0.000000e+00> : vector<64x8xf32>
    %148 = tpu.matmul %145, %147, %cst_154 {dimension_numbers = #tpu.dot_dimension_numbers<[1], [0], [0], [1], [0, 0, 1, 1], [], []>} : vector<64x8xbf16>, vector<8x8xbf16>, vector<64x8xf32> -> vector<64x8xf32>
    %149 = arith.addf %142, %148 : vector<64x8xf32>
    %c0_155 = arith.constant 0 : index
    %c0_156 = arith.constant 0 : index
    %150 = vector.load %arg5[%c0_155, %c0_156] : memref<1x8xf32, #tpu.memory_space<vmem>>, vector<1x8xf32>
    %151 = vector.broadcast %150 : vector<1x8xf32> to vector<64x8xf32>
    %152 = arith.addf %149, %151 : vector<64x8xf32>
    %153 = arith.truncf %35 : vector<64x4xf32> to vector<64x4xbf16>
    %c0_157 = arith.constant 0 : index
    %c0_158 = arith.constant 0 : index
    %154 = vector.load %arg6[%c0_157, %c0_158] : memref<4x8xbf16, #tpu.memory_space<vmem>>, vector<4x8xbf16>
    %cst_159 = arith.constant dense<0.000000e+00> : vector<64x8xf32>
    %155 = tpu.matmul %153, %154, %cst_159 {dimension_numbers = #tpu.dot_dimension_numbers<[1], [0], [0], [1], [0, 0, 1, 1], [], []>} : vector<64x4xbf16>, vector<4x8xbf16>, vector<64x8xf32> -> vector<64x8xf32>
    %c0_160 = arith.constant 0 : index
    %c0_161 = arith.constant 0 : index
    %156 = vector.load %arg7[%c0_160, %c0_161] : memref<1x8xf32, #tpu.memory_space<vmem>>, vector<1x8xf32>
    %157 = vector.broadcast %156 : vector<1x8xf32> to vector<64x8xf32>
    %158 = arith.addf %155, %157 : vector<64x8xf32>
    %159 = arith.addf %152, %158 : vector<64x8xf32>
    %cst_162 = arith.constant 0.000000e+00 : f32
    %160 = vector.broadcast %cst_162 : f32 to vector<64x8xf32>
    %161 = arith.maximumf %159, %160 : vector<64x8xf32>
    %162 = vector.shape_cast %161 : vector<64x8xf32> to vector<8x8x8xf32>
    %c0_163 = arith.constant 0 : index
    %c0_164 = arith.constant 0 : index
    %c0_165 = arith.constant 0 : index
    %c0_166 = arith.constant 0 : index
    %163 = vector.load %arg8[%c0_163, %c0_164, %c0_165, %c0_166] : memref<1x8x8x8xf32, #tpu.memory_space<vmem>>, vector<1x8x8x8xf32>
    %164 = vector.shape_cast %163 : vector<1x8x8x8xf32> to vector<8x8x8xf32>
    %165 = vector.shape_cast %162 : vector<8x8x8xf32> to vector<1x8x8x8xf32>
    tpu.vector_store %arg8[%c0_163, %c0_164, %c0_165, %c0_166], %165 {strides = array<i32>} : memref<1x8x8x8xf32, #tpu.memory_space<vmem>>, vector<1x8x8x8xf32>,
    return
  }
  func.func @transform_0(%arg0: i32) -> (i32, i32, i32, i32, i32) {
    %c0_i32 = arith.constant 0 : i32
    %c0_i32_0 = arith.constant 0 : i32
    %c0_i32_1 = arith.constant 0 : i32
    %c0_i32_2 = arith.constant 0 : i32
    %c0_i32_3 = arith.constant 0 : i32
    return %arg0, %c0_i32, %c0_i32_0, %c0_i32_1, %c0_i32_2 : i32, i32, i32, i32, i32
  }
  func.func @transform_1(%arg0: i32) -> (i32, i32, i32) {
    %c0_i32 = arith.constant 0 : i32
    %c0_i32_0 = arith.constant 0 : i32
    %c0_i32_1 = arith.constant 0 : i32
    %c0_i32_2 = arith.constant 0 : i32
    return %c0_i32, %c0_i32_0, %c0_i32_1 : i32, i32, i32
  }
  func.func @transform_2(%arg0: i32) -> (i32, i32) {
    %c0_i32 = arith.constant 0 : i32
    %c0_i32_0 = arith.constant 0 : i32
    %c0_i32_1 = arith.constant 0 : i32
    return %c0_i32, %c0_i32_0 : i32, i32
  }
  func.func @transform_3(%arg0: i32) -> (i32, i32, i32) {
    %c0_i32 = arith.constant 0 : i32
    %c0_i32_0 = arith.constant 0 : i32
    %c0_i32_1 = arith.constant 0 : i32
    %c0_i32_2 = arith.constant 0 : i32
    return %c0_i32, %c0_i32_0, %c0_i32_1 : i32, i32, i32
  }
  func.func @transform_4(%arg0: i32) -> (i32, i32) {
    %c0_i32 = arith.constant 0 : i32
    %c0_i32_0 = arith.constant 0 : i32
    %c0_i32_1 = arith.constant 0 : i32
    return %c0_i32, %c0_i32_0 : i32, i32
  }
  func.func @transform_5(%arg0: i32) -> (i32, i32) {
    %c0_i32 = arith.constant 0 : i32
    %c0_i32_0 = arith.constant 0 : i32
    %c0_i32_1 = arith.constant 0 : i32
    return %c0_i32, %c0_i32_0 : i32, i32
  }
  func.func @transform_6(%arg0: i32) -> (i32, i32) {
    %c0_i32 = arith.constant 0 : i32
    %c0_i32_0 = arith.constant 0 : i32
    %c0_i32_1 = arith.constant 0 : i32
    return %c0_i32, %c0_i32_0 : i32, i32
  }
  func.func @transform_7(%arg0: i32) -> (i32, i32, i32, i32) {
    %c0_i32 = arith.constant 0 : i32
    %c0_i32_0 = arith.constant 0 : i32
    %c0_i32_1 = arith.constant 0 : i32
    %c0_i32_2 = arith.constant 0 : i32
    return %arg0, %c0_i32, %c0_i32_0, %c0_i32_1 : i32, i32, i32, i32
  }
}

</mosaic_0001>

<bundles_post_ra>
// kernel: tpu_custom_call.1
= control target key start
LH: loop header
LB: loop body
LE: loop exit
PB: predicated region body
PF: predicated region fallthrough
CT: control target
= control target key end

     0   :  { %12 = vsyncpa [#allocation4], 0  ;;  %s3695_s0 = inlined_call_operand.vmem [shape: f32[2,4,9,9,4], index: 0, kind: input, shape index: {}]   ;;  %s3696_s1 = inlined_call_operand.vmem [shape: bf16[9,4,8], index: 1, kind: input, shape index: {}]   ;;  %s3697_s2 = inlined_call_operand.vmem [shape: f32[1,8], index: 2, kind: input, shape index: {}]   ;;  %s3698_s3 = inlined_call_operand.vmem [shape: bf16[9,8,8], index: 3, kind: input, shape index: {}]   ;;  %s3699_s4 = inlined_call_operand.vmem [shape: f32[1,8], index: 4, kind: input, shape index: {}]   ;;  %s3700_s5 = inlined_call_operand.vmem [shape: bf16[4,8], index: 5, kind: input, shape index: {}]   ;;  %s3701_s6 = inlined_call_operand.vmem [shape: f32[1,8], index: 6, kind: input, shape index: {}]   ;;  %s3702_s7 = inlined_call_operand.hbm [shape: f32[2,8,8,8], index: 7, kind: output, shape index: {}]  }
   0x1   :  { %14 = vsyncpa [#allocation4 + $0x1], 0  ;;  %s3109_s24 = smov 0   ;;  %s3111_s25 = smov 0  }
   0x2   :  { %s3113_s26 = smov 0   ;;  %s3115_s27 = smov 0  }
   0x3 LB: > { %s3130_s28 = sadd.s32 4294967295, %s3063_s27   ;;  %s2336_s29 = sadd.s32 4294967294, %s3063_s27   ;;  %s3063_s27 = sphi %s3115_s27, %s3708_s27   ;;  %s3059_s26 = sphi %s3113_s26, %s3707_s26   ;;  %s3055_s25 = sphi %s3111_s25, %s3706_s25   ;;  %s3051_s24 = sphi %s3109_s24, %s3705_s24  }
   0x4   : > { %s3134_s30 = sadd.s32 1, %s3063_s27   ;;  %s179_s8 = sadd.s32 1, %s3059_s26 }
   0x5   : > { %s176_s9 = ssub.s32 %s3063_s27, %s3134_s30  ;;  %p189_p0 = scmp.ne.s32.totalorder %s3059_s26, %s3055_s25 }
   0x6   : > { %p177_p1 = scmp.eq.s32.totalorder %s176_s9, 0  ;;  %p190_p2 = scmp.eq.s32.totalorder %s3130_s28, 1 }
   0x7   : > { %p195_p3 = scmp.ne.s32.totalorder %s3055_s25, %s3051_s24  ;;  %p196_p4 = scmp.eq.s32.totalorder %s2336_s29, 1 }
   0x8   : > { %s3145_s10 = scalar_select %p177_p1, %s3059_s26, %s179_s8  }
   0x9   : > { %p3147_p5 = por %p190_p2, %p189_p0  ;;  %p3151_p6 = por %p196_p4, %p195_p3 }
   0xa   : > { %p2339_p7 = scmp.ge.s32.totalorder %s3063_s27, 1  ;;  %p240_p8 = scmp.lt.s32.totalorder %s3063_s27, 3 }
   0xc   : > { %p241_p9 = pnand %p2339_p7, %p240_p8 }
   0xd   : > { %v2350_v0 = vld [vmem:[%s3696_s1 + $0x2] sm:$0x3] (!%p241_p9)  ;;  %vm319_vm0 = vcmask (!%p241_p9), 1041408   ;;  %p272_p10 = scmp.lt.s32.totalorder (!%p241_p9), %s3130_s28, 1  ;;  %v290_v2 = vld [vmem:[%s3696_s1] sm:$0x3] (!%p241_p9) }
   0xe   : > { %244 = sbr.rel (%p241_p9) target bundleno = 773 (0x305), region = 48  ;;  %2938 = vmatprep.subr.msk.bf16.mxu0 (!%p241_p9), %vm319_vm0, %v2350_v0  ;;  %v321_v1 = vsel (!%p241_p9), %vm319_vm0, %v2350_v0, 0  ;;  %vm306_vm1 = vcmask (!%p241_p9), 31744   ;;  %v401_v12 = vsel (!%p241_p9), %vm319_vm0, %v290_v2, 0  ;;  %v2359_v15 = vld [vmem:[%s3696_s1 + $0x4] sm:$0x3] (!%p241_p9) }
   0xf   : > { %2595 = vmatpush3.bf16.msra.mxu0 (!%p241_p9), %v321_v1  ;;  %v495_v50 = vsel (!%p241_p9), %vm319_vm0, %v2359_v15, 0  ;;  %v2372_v51 = vld [vmem:[%s3696_s1 + $0x6] sm:$0x3] (!%p241_p9)  ;;  %v2385_v58 = vld [vmem:[%s3696_s1 + $0x8] sm:$0x3] (!%p241_p9)  ;;  %vm1209_vm2 = vcmask (!%p241_p9), 64512  }
  0x10   : > { %2939 = vmatprep.subr.msk.bf16.mxu0 (!%p241_p9), %vm319_vm0, %v290_v2  ;;  %v598_v57 = vsel (!%p241_p9), %vm319_vm0, %v2372_v51, 0  ;;  %vm1217_vm3 = vcmask (!%p241_p9), 57344   ;;  %vm1211_vm4 = vcmask (!%p241_p9), 58368   ;;  %vm1281_vm5 = vcmask (!%p241_p9), 1043456   ;;  %s2498_s23 = sshll.u32 (!%p241_p9), %s3130_s28, 10  ;;  %s3066_s15 = smov (!%p241_p9), [#allocation3]  }
  0x11   : > { %s3645_s13 = scalar_lea.hbm (!%p241_p9), %s3702_s7, %s2498_s23  ;;  %s3005_s16 = sshll.u32 (!%p241_p9), %s3066_s15, 4  ;;  %s3006_s16 = int_to_ptr.vmem [resolvable:$false] %s3005_s16 }
  0x15   : > { %s273_s17 = scalar_select %p272_p10, %s3130_s28, 1 }
  0x17   : > { %s2958_s18 = smul.u32 576, %s273_s17  ;;  %s3007_s17 = scalar_lea.vmem %s3006_s16, 2048 }
  0x19   : > { %s3171_s21 = scalar_lea.vmem %s3695_s0, %s2958_s18  ;;  %s269_s18 = sand.u32 1, %s3055_s25  }
  0x1a   : > { %v2342_v3 = vld [vmem:[%s3171_s21 + $0x90] sm:$0xff]  ;;  %v3175_v4 = vld [vmem:[%s3171_s21 + $0xa0] sm:$0xff]  ;;  %s2340_s22 = sshll.u32 %s269_s18, 6  ;;  %s3654_s28 = scalar_lea.sflag [#allocation4], %s269_s18 }
  0x1b   : > { %v3178_v5 = vld [vmem:[%s3171_s21 + $0xb0] sm:$0xff]  ;;  %v300_v6 = vpack.c.bf16 %v3175_v4, %v2342_v3  ;;  %v3182_v7 = vld [vmem:[%s3171_s21 + $0xc0] sm:$0xff] }
  0x1c   : > { %v3185_v8 = vld [vmem:[%s3171_s21 + $0xd0] sm:$0xff]  ;;  %v3188_v9 = vld [vmem:[%s3171_s21 + $0xe0] sm:$0xff]  ;;  %v990_v10 = vpack.c.bf16 %v3178_v5, %v3175_v4  ;;  %v301_v11 = vpack.c.bf16 %v3182_v7, %v3178_v5  ;;  %v3065_v4 = vmov 0.0  }
  0x1d   : > { %v302_v13 = vpack.c.bf16 %v3188_v9, %v3185_v8  ;;  %v3198_v14 = vld [vmem:[%s3171_s21 + $0xf0] sm:$0xff]  ;;  %v991_v16 = vpack.c.bf16 %v3185_v8, %v3182_v7  ;;  %2596 = vmatprep.mubr.msk.bf16.mxu0 %vm306_vm1, %v300_v6  ;;  %v3210_v18 = vld [vmem:[%s3171_s21 + $0x20] sm:$0xff]  ;;  %1210 = vst.msk [vmem:[#allocation2] sm:$0xff] %vm1209_vm2, %v3065_v4  ;;  %1214 = vst.msk [vmem:[#allocation2 + $0x90] sm:$0xff] %vm1209_vm2, %v3065_v4 }
  0x1e   : > { %v3207_v17 = vld [vmem:[%s3171_s21 + $0x10] sm:$0xff]  ;;  %v992_v20 = vpack.c.bf16 %v3198_v14, %v3188_v9  ;;  %2597 = vmatmul.mubr.msk.bf16.vlgmr.msra.gmra.mrb[0].mxu0 %vm306_vm1, %v301_v11  ;;  %v3219_v21 = vld [vmem:[%s3171_s21 + $0x40] sm:$0xff]  ;;  %v701_v11 = vsel %vm319_vm0, %v2385_v58, 0  ;;  %1218 = vst.msk [vmem:[#allocation2 + $0x10] sm:$0x1] %vm1217_vm3, %v3065_v4 }
  0x1f   : > { %v3213_v19 = vld [vmem:[%s3171_s21 + $0x30] sm:$0xff]  ;;  %v3225_v23 = vld [vmem:[%s3171_s21 + $0x60] sm:$0xff]  ;;  %v887_v24 = vpack.c.bf16 %v3210_v18, %v3207_v17  ;;  %2605 = vmatpush3.bf16.msra.mxu0 %v401_v12  ;;  %2600 = vmatprep.mubr.msk.bf16.mxu0 %vm306_vm1, %v302_v13  ;;  %v2398_v12 = vld [vmem:[%s3696_s1 + $0xa] sm:$0x3]  ;;  %1219 = vst.msk [vmem:[#allocation2 + $0x20] sm:$0x1] %vm1217_vm3, %v3065_v4 }
  0x20   : > { %v3222_v22 = vld [vmem:[%s3171_s21 + $0x50] sm:$0xff]  ;;  %v3231_v25 = vld [vmem:[%s3171_s21 + $0x100] sm:$0xff]  ;;  %v888_v28 = vpack.c.bf16 %v3219_v21, %v3213_v19  ;;  %2940 = vmatprep.subr.msk.bf16.mxu0 %vm319_vm0, %v2359_v15  ;;  %v287_v42 = vpack.c.bf16 %v3213_v19, %v3210_v18  ;;  %1220 = vst.msk [vmem:[#allocation2 + $0x30] sm:$0x1] %vm1217_vm3, %v3065_v4  ;;  %1221 = vst.msk [vmem:[#allocation2 + $0x40] sm:$0x1] %vm1217_vm3, %v3065_v4 }
  0x21   : > { %v278_v26 = vld [vmem:[%s3171_s21] sm:$0xff]  ;;  %v3235_v27 = vld [vmem:[%s3171_s21 + $0x11] sm:$0xff]  ;;  %v889_v29 = vpack.c.bf16 %v3225_v23, %v3222_v22  ;;  %v303_v37 = vpack.c.bf16 %v3231_v25, %v3198_v14  ;;  %v288_v46 = vpack.c.bf16 %v3222_v22, %v3219_v21  ;;  %1222 = vst.msk [vmem:[#allocation2 + $0x50] sm:$0x1] %vm1217_vm3, %v3065_v4  ;;  %1223 = vst.msk [vmem:[#allocation2 + $0x60] sm:$0x1] %vm1217_vm3, %v3065_v4 }
  0x22   : > { %v3243_v30 = vld [vmem:[%s3171_s21 + $0x21] sm:$0xff]  ;;  %v3246_v31 = vld [vmem:[%s3171_s21 + $0x31] sm:$0xff]  ;;  %v286_v39 = vpack.c.bf16 %v3207_v17, %v278_v26  ;;  %1224 = vst.msk [vmem:[#allocation2 + $0x70] sm:$0x1] %vm1217_vm3, %v3065_v4  ;;  %1225 = vst.msk [vmem:[#allocation2 + $0x80] sm:$0x1] %vm1217_vm3, %v3065_v4 }
  0x23   : > { %v3249_v32 = vld [vmem:[%s3171_s21 + $0x41] sm:$0xff]  ;;  %v3252_v33 = vld [vmem:[%s3171_s21 + $0x51] sm:$0xff]  ;;  %v1092_v35 = vpack.c.bf16 %v3243_v30, %v3235_v27  ;;  %v477_v55 = vpack.c.bf16 %v3246_v31, %v3243_v30  ;;  %1226 = vst.msk [vmem:[#allocation2 + $0x19] sm:$0x1] %vm1217_vm3, %v3065_v4  ;;  %1227 = vst.msk [vmem:[#allocation2 + $0x29] sm:$0x1] %vm1217_vm3, %v3065_v4 }
  0x24   : > { %v3255_v34 = vld [vmem:[%s3171_s21 + $0x61] sm:$0xff]  ;;  %v1093_v36 = vpack.c.bf16 %v3249_v32, %v3246_v31  ;;  %v3269_v40 = vld [vmem:[%s3171_s21 + $0x70] sm:$0xff]  ;;  %v478_v56 = vpack.c.bf16 %v3252_v33, %v3249_v32  ;;  %1228 = vst.msk [vmem:[#allocation2 + $0x39] sm:$0x1] %vm1217_vm3, %v3065_v4  ;;  %1229 = vst.msk [vmem:[#allocation2 + $0x49] sm:$0x1] %vm1217_vm3, %v3065_v4 }
  0x25   : > { %v1094_v38 = vpack.c.bf16 %v3255_v34, %v3252_v33  ;;  %v3272_v41 = vld [vmem:[%s3171_s21 + $0x71] sm:$0xff]  ;;  %v3277_v43 = vld [vmem:[%s3171_s21 + $0x80] sm:$0xff]  ;;  %v289_v53 = vpack.c.bf16 %v3269_v40, %v3225_v23  ;;  %1230 = vst.msk [vmem:[#allocation2 + $0x59] sm:$0x1] %vm1217_vm3, %v3065_v4  ;;  %1231 = vst.msk [vmem:[#allocation2 + $0x69] sm:$0x1] %vm1217_vm3, %v3065_v4 }
  0x26   : > { %2601 = vmatmul.mubr.msk.bf16.gmra.mrb[4].mxu0 %vm306_vm1, %v303_v37  ;;  %v3280_v44 = vld [vmem:[%s3171_s21 + $0x110] sm:$0xff]  ;;  %v3283_v45 = vld [vmem:[%s3171_s21 + $0x81] sm:$0xff]  ;;  %v890_v47 = vpack.c.bf16 %v3277_v43, %v3269_v40  ;;  %v479_v61 = vpack.c.bf16 %v3272_v41, %v3255_v34  ;;  %1232 = vst.msk [vmem:[#allocation2 + $0x79] sm:$0x1] %vm1217_vm3, %v3065_v4  ;;  %1233 = vst.msk [vmem:[#allocation2 + $0x89] sm:$0x1] %vm1217_vm3, %v3065_v4 }
  0x27   : > { %2606 = vmatprep.mubr.msk.bf16.mxu0 %vm306_vm1, %v286_v39  ;;  %v993_v48 = vpack.c.bf16 %v3280_v44, %v3231_v25  ;;  %v1095_v49 = vpack.c.bf16 %v3283_v45, %v3272_v41  ;;  %v468_v52 = vld [vmem:[%s3171_s21 + $0x1] sm:$0xff]  ;;  %v2365_v60 = vld [vmem:[%s3171_s21 + $0x130] sm:$0xff]  ;;  %1212 = vst.msk [vmem:[#allocation2 + $0x8] sm:$0x3] %vm1211_vm4, %v3065_v4  ;;  %1215 = vst.msk [vmem:[#allocation2 + $0x98] sm:$0x3] %vm1211_vm4, %v3065_v4 }
  0x28   : > { %v476_v54 = vpack.c.bf16 %v3235_v27, %v468_v52  ;;  %v2364_v59 = vld [vmem:[%s3171_s21 + $0x120] sm:$0xff]  ;;  %v2367_v0 = vld [vmem:[%s3171_s21 + $0x150] sm:$0xff] }
  0x29   : > { %v579_v62 = vpack.c.bf16 %v2365_v60, %v2364_v59  ;;  %v2366_v63 = vld [vmem:[%s3171_s21 + $0x140] sm:$0xff]  ;;  %v2369_v2 = vld [vmem:[%s3171_s21 + $0x170] sm:$0xff] }
  0x2a   : > { %v2368_v1 = vld [vmem:[%s3171_s21 + $0x160] sm:$0xff]  ;;  %v580_v3 = vpack.c.bf16 %v2367_v0, %v2366_v63  ;;  %v2371_v15 = vld [vmem:[%s3171_s21 + $0x190] sm:$0xff] }
  0x2b   : > { %v581_v6 = vpack.c.bf16 %v2369_v2, %v2368_v1  ;;  %v2370_v13 = vld [vmem:[%s3171_s21 + $0x180] sm:$0xff]  ;;  %v2377_v26 = vld [vmem:[%s3171_s21 + $0x1b0] sm:$0xff] }
  0x2c   : > { %v2378_v37 = vld [vmem:[%s3171_s21 + $0x1c0] sm:$0xff]  ;;  %v582_v39 = vpack.c.bf16 %v2371_v15, %v2370_v13  ;;  %v2391_v60 = vld [vmem:[%s3171_s21 + $0x131] sm:$0xff] }
  0x2d   : > { %v2382_v52 = vld [vmem:[%s3171_s21 + $0x200] sm:$0xff]  ;;  %v2393_v0 = vld [vmem:[%s3171_s21 + $0x151] sm:$0xff] }
  0x2e   : > { %2607 = vmatmul.mubr.msk.bf16.vlgmr.msra.gmra.mrb[0].mxu0 %vm306_vm1, %v287_v42  ;;  %v3338_v42 = vpack.c.bf16 %v2378_v37, %v2377_v26  ;;  %v2390_v59 = vld [vmem:[%s3171_s21 + $0x121] sm:$0xff]  ;;  %v2395_v2 = vld [vmem:[%s3171_s21 + $0x171] sm:$0xff]  ;;  %v2442_v9 = vld [vmem:[%s3697_s2] ss:$0 sm:$0xff] }
  0x2f   : > { %2615 = vmatpush3.bf16.msra.mxu0 %v495_v50  ;;  %2610 = vmatprep.mubr.msk.bf16.mxu0 %vm306_vm1, %v288_v46  ;;  %v2379_v46 = vld [vmem:[%s3171_s21 + $0x1d0] sm:$0xff]  ;;  %v2380_v50 = vld [vmem:[%s3171_s21 + $0x1e0] sm:$0xff] }
  0x30   : > { %2941 = vmatprep.subr.msk.bf16.mxu0 %vm319_vm0, %v2372_v51  ;;  %v2381_v51 = vld [vmem:[%s3171_s21 + $0x1f0] sm:$0xff]  ;;  %v2392_v63 = vld [vmem:[%s3171_s21 + $0x141] sm:$0xff] }
  0x31   : > { %v2394_v1 = vld [vmem:[%s3171_s21 + $0x161] sm:$0xff]  ;;  %v2397_v15 = vld [vmem:[%s3171_s21 + $0x191] sm:$0xff] }
  0x32   : > { %v2396_v13 = vld [vmem:[%s3171_s21 + $0x181] sm:$0xff] }
  0x33   : > { %v787_v26 = vpack.c.bf16 %v2397_v15, %v2396_v13  ;;  %v2443_v5 = vld [vmem:[%s3698_s3 + $0x4] sm:$0xf]  ;;  %v1254_v8 = vld [vmem:[%s3698_s3] sm:$0xf] }
  0x34   : > { %v1283_v7 = vsel %vm1281_vm5, %v2443_v5, 0  ;;  %2948 = vmatprep.subr.msk.bf16.mxu1 %vm1281_vm5, %v2443_v5  ;;  %v1430_v15 = vld [vmem:[#allocation2 + $0x2] sm:$0xff] }
  0x35   : > { %2785 = vmatpush3.bf16.msra.mxu1 %v1283_v7 }
  0x36   : > { %2611 = vmatmul.mubr.msk.bf16.gmra.mrb[4].mxu0 %vm306_vm1, %v289_v53  ;;  %v3347_v53 = vpack.c.bf16 %v2380_v50, %v2379_v46  ;;  %2949 = vmatprep.subr.msk.bf16.mxu1 %vm1281_vm5, %v1254_v8 }
  0x37   : > { %2616 = vmatprep.mubr.msk.bf16.mxu0 %vm306_vm1, %v476_v54  ;;  %v3349_v54 = vpack.c.bf16 %v2382_v52, %v2381_v51  ;;  %v1242_v52 = vld [vmem:[#allocation2] sm:$0xff] }
  0x3e   : > { %2617 = vmatmul.mubr.msk.bf16.vlgmr.msra.gmra.mrb[0].mxu0 %vm306_vm1, %v477_v55  ;;  %v803_v55 = vsel %vm319_vm0, %v2398_v12, 0 }
  0x3f   : > { %2625 = vmatpush3.bf16.msra.mxu0 %v598_v57  ;;  %2620 = vmatprep.mubr.msk.bf16.mxu0 %vm306_vm1, %v478_v56  ;;  %v2411_v56 = vld [vmem:[%s3696_s1 + $0xc] sm:$0x3]  ;;  %v2383_v57 = vld [vmem:[%s3171_s21 + $0x210] sm:$0xff] }
  0x40   : > { %2942 = vmatprep.subr.msk.bf16.mxu0 %vm319_vm0, %v2385_v58  ;;  %v2384_v58 = vld [vmem:[%s3171_s21 + $0x220] sm:$0xff]  ;;  %s271_s21 = scalar_lea.vmem [#allocation3], %s2340_s22 }
  0x41   : > { %s2274_s29 = sshll.u32 %s271_s21, 4  ;;  %s3647_s29 = int_to_ptr.vmem [resolvable:$true] %s2274_s29 }
  0x42   : > { %s3001_s14 = scalar_lea.vmem %s3647_s29, 1024  ;;  %p3008_p0 = scmp.lt.s32.totalorder %s3647_s29, %s3006_s16 }
  0x43   : > { %p3002_p11 = scmp.ne.s32.totalorder %s3647_s29, %s3001_s14  ;;  %p3009_p1 = scmp.lt.s32.totalorder %s3007_s17, %s3001_s14 }
  0x45   : > { %p3003_p12 = pnand %p3002_p11, %p3147_p5  ;;  %p3010_p2 = por %p3009_p1, %p3008_p0 }
  0x46   : > { %2621 = vmatmul.mubr.msk.bf16.gmra.mrb[4].mxu0 %vm306_vm1, %v479_v61  ;;  %v3364_v61 = vpack.c.bf16 %v2384_v58, %v2383_v57 }
  0x47   : > { %2626 = vmatprep.mubr.msk.bf16.mxu0 %vm306_vm1, %v579_v62  ;;  %v784_v62 = vpack.c.bf16 %v2391_v60, %v2390_v59  ;;  %v1363_v59 = vsel %vm1281_vm5, %v1254_v8, 0  ;;  %p3004_p13 = pneg %p3003_p12 }
  0x49   : > { %p3011_p3 = pnand %p3010_p2, %p3004_p13 }
  0x4e   : > { %2627 = vmatmul.mubr.msk.bf16.vlgmr.msra.gmra.mrb[0].mxu0 %vm306_vm1, %v580_v3  ;;  %v785_v3 = vpack.c.bf16 %v2393_v0, %v2392_v63 }
  0x4f   : > { %2635 = vmatpush3.bf16.msra.mxu0 %v701_v11  ;;  %2630 = vmatprep.mubr.msk.bf16.mxu0 %vm306_vm1, %v581_v6  ;;  %v786_v6 = vpack.c.bf16 %v2395_v2, %v2394_v1  ;;  %v906_v11 = vsel %vm319_vm0, %v2411_v56, 0 }
  0x50   : > { %2943 = vmatprep.subr.msk.bf16.mxu0 %vm319_vm0, %v2398_v12  ;;  %v2424_v12 = vld [vmem:[%s3696_s1 + $0xe] sm:$0x3] }
  0x51   : > { %v1009_v37 = vsel %vm319_vm0, %v2424_v12, 0 }
  0x56   : > { %2631 = vmatmul.mubr.msk.bf16.gmra.mrb[4].mxu0 %vm306_vm1, %v582_v39  ;;  %v2437_v39 = vld [vmem:[%s3696_s1 + $0x10] sm:$0x3] }
  0x57   : > { %2636 = vmatprep.mubr.msk.bf16.mxu0 %vm306_vm1, %v3338_v42  ;;  %v1111_v17 = vsel %vm319_vm0, %v2437_v39, 0 }
  0x5e   : > { %2637 = vmatmul.mubr.msk.bf16.vlgmr.msra.gmra.mrb[0].mxu0 %vm306_vm1, %v3347_v53 }
  0x5f   : > { %2645 = vmatpush3.bf16.msra.mxu0 %v803_v55  ;;  %2640 = vmatprep.mubr.msk.bf16.mxu0 %vm306_vm1, %v3349_v54 }
  0x60   : > { %2944 = vmatprep.subr.msk.bf16.mxu0 %vm319_vm0, %v2411_v56 }
  0x66   : > { %2641 = vmatmul.mubr.msk.bf16.gmra.mrb[4].mxu0 %vm306_vm1, %v3364_v61 }
  0x67   : > { %2646 = vmatprep.mubr.msk.bf16.mxu0 %vm306_vm1, %v784_v62  ;;  %v2452_v62 = vld [vmem:[%s3698_s3 + $0x8] sm:$0xf] }
  0x6e   : > { %2647 = vmatmul.mubr.msk.bf16.vlgmr.msra.gmra.mrb[0].mxu0 %vm306_vm1, %v785_v3  ;;  %v1457_v3 = vsel %vm1281_vm5, %v2452_v62, 0 }
  0x6f   : > { %2655 = vmatpush3.bf16.msra.mxu0 %v906_v11  ;;  %2650 = vmatprep.mubr.msk.bf16.mxu0 %vm306_vm1, %v786_v6 }
  0x70   : > { %2945 = vmatprep.subr.msk.bf16.mxu0 %vm319_vm0, %v2424_v12  ;;  %v2457_v12 = vld [vmem:[%s3698_s3 + $0xc] sm:$0xf] }
  0x76   : > { %2651 = vmatmul.mubr.msk.bf16.gmra.mrb[4].mxu0 %vm306_vm1, %v787_v26 }
  0x77   : > { %2656 = vmatprep.mubr.msk.bf16.mxu0 %vm306_vm1, %v887_v24 }
  0x7e   : > { %2657 = vmatmul.mubr.msk.bf16.vlgmr.msra.gmra.mrb[0].mxu0 %vm306_vm1, %v888_v28 }
  0x7f   : > { %2665 = vmatpush3.bf16.msra.mxu0 %v1009_v37  ;;  %2660 = vmatprep.mubr.msk.bf16.mxu0 %vm306_vm1, %v889_v29 }
  0x80   : > { %2946 = vmatprep.subr.msk.bf16.mxu0 %vm319_vm0, %v2437_v39 }
  0x86   : > { %2661 = vmatmul.mubr.msk.bf16.gmra.mrb[4].mxu0 %vm306_vm1, %v890_v47 }
  0x87   : > { %2666 = vmatprep.mubr.msk.bf16.mxu0 %vm306_vm1, %v990_v10 }
  0x8e   : > { %2667 = vmatmul.mubr.msk.bf16.vlgmr.msra.gmra.mrb[0].mxu0 %vm306_vm1, %v991_v16 }
  0x8f   : > { %2675 = vmatpush3.bf16.msra.mxu0 %v1111_v17  ;;  %2670 = vmatprep.mubr.msk.bf16.mxu0 %vm306_vm1, %v992_v20 }
  0x90   : > { %2947 = vmatprep.subr.msk.bf16.mxu0 %vm1281_vm5, %v2443_v5 }
  0x96   : > { %2671 = vmatmul.mubr.msk.bf16.gmra.mrb[4].mxu0 %vm306_vm1, %v993_v48 }
  0x97   : > { %2676 = vmatprep.mubr.msk.bf16.mxu0 %vm306_vm1, %v1092_v35 }
  0x9e   : > { %2677 = vmatmul.mubr.msk.bf16.vlgmr.msra.gmra.mrb[0].mxu0 %vm306_vm1, %v1093_v36  ;;  %v1255_v36 = vld [vmem:[#allocation2 + $0x1] sm:$0xff] }
  0x9f   : > { %2680 = vmatprep.mubr.msk.bf16.mxu0 %vm306_vm1, %v1094_v38  ;;  %2685 = vmatpush3.bf16.msra.mxu0 %v1283_v7 }
  0xa6   : > { %2681 = vmatmul.mubr.msk.bf16.gmra.mrb[4].mxu0 %vm306_vm1, %v1095_v49 }
 0x171   : > { %v2678_v10 = vpop.f32.mrb[0].mxu0 }
 0x172   : > { %v1195_v14 = vadd.f32 %v2678_v10, %v2442_v9  ;;  %v1147_v16 = vpop.f32.mrb[1].mxu0 }
 0x173   : > { %v1193_v18 = vadd.f32 %v2442_v9, %v1147_v16  ;;  %v2679_v19 = vpop.f32.mrb[2].mxu0  ;;  %v2462_v16 = vld [vmem:[%s3698_s3 + $0x10] sm:$0xf] }
 0x174   : > { %v1203_v20 = vmax.f32 %v1195_v14, 0.0  ;;  %v1196_v21 = vadd.f32 %v2679_v19, %v2442_v9  ;;  %v1150_v22 = vpop.f32.mrb[3].mxu0 }
 0x175   : > { %v1201_v23 = vmax.f32 %v1193_v18, 0.0  ;;  %v1194_v24 = vadd.f32 %v2442_v9, %v1150_v22 }
 0x176   : > { %1236 = vst.msk [vmem:[#allocation2 + $0x31] sm:$0xff] %vm1209_vm2, %v1203_v20  ;;  %v1204_v25 = vmax.f32 %v1196_v21, 0.0 }
 0x177   : > { %1234 = vst.msk [vmem:[#allocation2 + $0x11] sm:$0xff] %vm1209_vm2, %v1201_v23  ;;  %v1202_v27 = vmax.f32 %v1194_v24, 0.0  ;;  %v1661_v23 = vsel %vm1281_vm5, %v2462_v16, 0 }
 0x178   : > { %1237 = vst.msk [vmem:[#allocation2 + $0x41] sm:$0xff] %vm1209_vm2, %v1204_v25  ;;  %v2467_v25 = vld [vmem:[%s3698_s3 + $0x14] sm:$0xf] }
 0x179   : > { %1235 = vst.msk [vmem:[#allocation2 + $0x21] sm:$0xff] %vm1209_vm2, %v1202_v27  ;;  %v2682_v28 = vpop.f32.mrb[4].mxu0 }
 0x17a   : > { %v1199_v29 = vadd.f32 %v2682_v28, %v2442_v9  ;;  %v1163_v30 = vpop.f32.mrb[5].mxu0 }
 0x17b   : > { %v1197_v31 = vadd.f32 %v2442_v9, %v1163_v30  ;;  %v2683_v32 = vpop.f32.mrb[6].mxu0 }
 0x17c   : > { %v1207_v33 = vmax.f32 %v1199_v29, 0.0  ;;  %v1200_v34 = vadd.f32 %v2683_v32, %v2442_v9  ;;  %v1166_v35 = vpop.f32.mrb[7].mxu0 }
 0x17d   : > { %v1205_v38 = vmax.f32 %v1197_v31, 0.0  ;;  %v1198_v40 = vadd.f32 %v2442_v9, %v1166_v35  ;;  %v3482_v48 = vld [vmem:[#allocation2 + $0x31] sm:$0xff]  ;;  %v1559_v9 = vsel %vm1281_vm5, %v2457_v12, 0  ;;  %v1763_v31 = vsel %vm1281_vm5, %v2467_v25, 0 }
 0x17e   : > { %1240 = vst.msk [vmem:[#allocation2 + $0x71] sm:$0xff] %vm1209_vm2, %v1207_v33  ;;  %v1208_v41 = vmax.f32 %v1200_v34, 0.0  ;;  %v3475_v43 = vld [vmem:[#allocation2 + $0x11] sm:$0xff] }
 0x17f   : > { %1238 = vst.msk [vmem:[#allocation2 + $0x51] sm:$0xff] %vm1209_vm2, %v1205_v38  ;;  %v1206_v44 = vmax.f32 %v1198_v40, 0.0  ;;  %v1263_v45 = vpack.c.bf16 %v3475_v43, %v1255_v36  ;;  %v3492_v46 = vld [vmem:[#allocation2 + $0x41] sm:$0xff]  ;;  %v1243_v55 = vld [vmem:[#allocation2 + $0x10] sm:$0xff]  ;;  %v2472_v33 = vld [vmem:[%s3698_s3 + $0x18] sm:$0xf] }
 0x180   : > { %1241 = vst.msk [vmem:[#allocation2 + $0x81] sm:$0xff] %vm1209_vm2, %v1208_v41  ;;  %v3480_v47 = vld [vmem:[#allocation2 + $0x21] sm:$0xff]  ;;  %v1250_v60 = vpack.c.bf16 %v1243_v55, %v1242_v52  ;;  %v1245_v1 = vld [vmem:[#allocation2 + $0x30] sm:$0xff]  ;;  %v1643_v30 = vpack.c.bf16 %v3492_v46, %v3482_v48  ;;  %v1866_v40 = vsel %vm1281_vm5, %v2472_v33, 0 }
 0x181   : > { %1239 = vst.msk [vmem:[#allocation2 + $0x61] sm:$0xff] %vm1209_vm2, %v1206_v44  ;;  %2686 = vmatprep.mubr.msk.bf16.mxu0 %vm1209_vm2, %v1263_v45  ;;  %v3488_v49 = vpack.c.bf16 %v3482_v48, %v3480_v47  ;;  %v1244_v63 = vld [vmem:[#allocation2 + $0x20] sm:$0xff]  ;;  %v1431_v26 = vld [vmem:[#allocation2 + $0x12] sm:$0xff]  ;;  %v1642_v29 = vpack.c.bf16 %v3480_v47, %v3475_v43  ;;  %v2477_v43 = vld [vmem:[%s3698_s3 + $0x1c] sm:$0xf] }
 0x182   : > { %v3518_v2 = vpack.c.bf16 %v1245_v1, %v1244_v63  ;;  %v1246_v6 = vld [vmem:[#allocation2 + $0x40] sm:$0xff]  ;;  %v1438_v17 = vpack.c.bf16 %v1431_v26, %v1430_v15  ;;  %v1433_v7 = vld [vmem:[#allocation2 + $0x32] sm:$0xff]  ;;  %v1540_v21 = vpack.c.bf16 %v1244_v63, %v1243_v55  ;;  %v1968_v47 = vsel %vm1281_vm5, %v2477_v43, 0 }
 0x183   : > { %2687 = vmatmul.mubr.msk.bf16.vlgmr.msra.gmra.mrb[8].mxu0 %vm1209_vm2, %v3488_v49  ;;  %v1432_v4 = vld [vmem:[#allocation2 + $0x22] sm:$0xff]  ;;  %v1541_v22 = vpack.c.bf16 %v1246_v6, %v1245_v1  ;;  %v2160_v55 = vld [vmem:[%s3700_s5] sm:$0x3] }
 0x184   : > { %v3536_v8 = vpack.c.bf16 %v1433_v7, %v1432_v4  ;;  %v1434_v10 = vld [vmem:[#allocation2 + $0x42] sm:$0xff]  ;;  %v1744_v36 = vpack.c.bf16 %v1432_v4, %v1431_v26 }
 0x185   : > { %v3502_v57 = vld [vmem:[#allocation2 + $0x71] sm:$0xff]  ;;  %v1745_v38 = vpack.c.bf16 %v1434_v10, %v1433_v7  ;;  %v2482_v48 = vld [vmem:[%s3698_s3 + $0x20] sm:$0xf] }
 0x186   : > { %v3494_v50 = vld [vmem:[#allocation2 + $0x51] sm:$0xff]  ;;  %v2070_v52 = vsel %vm1281_vm5, %v2482_v48, 0 }
 0x187   : > { %v3498_v51 = vpack.c.bf16 %v3494_v50, %v3492_v46  ;;  %v1247_v0 = vld [vmem:[#allocation2 + $0x50] sm:$0xff]  ;;  %v1539_v27 = vld [vmem:[#allocation2 + $0x80] sm:$0xff] }
 0x188   : > { %v3500_v56 = vld [vmem:[#allocation2 + $0x61] sm:$0xff]  ;;  %v3521_v11 = vpack.c.bf16 %v1247_v0, %v1246_v6  ;;  %v1249_v37 = vld [vmem:[#allocation2 + $0x70] sm:$0xff] }
 0x189   : > { %2690 = vmatprep.mubr.msk.bf16.mxu1 %vm1209_vm2, %v3498_v51  ;;  %v3508_v58 = vpack.c.bf16 %v3502_v57, %v3500_v56  ;;  %v1248_v13 = vld [vmem:[#allocation2 + $0x60] sm:$0xff]  ;;  %v1435_v5 = vld [vmem:[#allocation2 + $0x52] sm:$0xff]  ;;  %v1543_v28 = vpack.c.bf16 %v1539_v27, %v1249_v37  ;;  %v1644_v32 = vpack.c.bf16 %v3500_v56, %v3494_v50 }
 0x18a   : > { %v3531_v39 = vpack.c.bf16 %v1249_v37, %v1248_v13  ;;  %v3539_v14 = vpack.c.bf16 %v1435_v5, %v1434_v10  ;;  %v1436_v18 = vld [vmem:[#allocation2 + $0x62] sm:$0xff]  ;;  %v1437_v19 = vld [vmem:[#allocation2 + $0x72] sm:$0xff]  ;;  %v1542_v24 = vpack.c.bf16 %v1248_v13, %v1247_v0  ;;  %v2487_v0 = vld [vmem:[%s3699_s4] ss:$0 sm:$0xff] }
 0x18b   : > { %2691 = vmatmul.mubr.msk.bf16.vlgmr.msra.gmra.mrb[0].mxu1 %vm1209_vm2, %v3508_v58  ;;  %v3549_v20 = vpack.c.bf16 %v1437_v19, %v1436_v18  ;;  %v1641_v34 = vld [vmem:[#allocation2 + $0x81] sm:$0xff]  ;;  %v1746_v41 = vpack.c.bf16 %v1436_v18, %v1435_v5  ;;  %v1846_v46 = vld [vmem:[#allocation2 + $0x90] sm:$0xff] }
 0x18c   : > { %2695 = vmatpush3.bf16.msra.mxu1 %v1363_v59  ;;  %2696 = vmatprep.mubr.msk.bf16.mxu1 %vm1209_vm2, %v1250_v60  ;;  %v1645_v35 = vpack.c.bf16 %v1641_v34, %v3502_v57  ;;  %v1743_v44 = vld [vmem:[#allocation2 + $0x82] sm:$0xff]  ;;  %v1850_v50 = vpack.c.bf16 %v1846_v46, %v1539_v27  ;;  %v1948_v56 = vld [vmem:[#allocation2 + $0x91] sm:$0xff] }
 0x18d   : > { %2950 = vmatprep.subr.msk.bf16.mxu1 %vm1281_vm5, %v2452_v62  ;;  %v1747_v45 = vpack.c.bf16 %v1743_v44, %v1437_v19  ;;  %v1952_v57 = vpack.c.bf16 %v1948_v56, %v1641_v34 }
 0x193   : > { %2697 = vmatmul.mubr.msk.bf16.vlgmr.msra.gmra.mrb[4].mxu1 %vm1209_vm2, %v3518_v2 }
 0x194   : > { %2705 = vmatpush3.bf16.msra.mxu1 %v1457_v3  ;;  %2700 = vmatprep.mubr.msk.bf16.mxu1 %vm1209_vm2, %v3521_v11 }
 0x195   : > { %2951 = vmatprep.subr.msk.bf16.mxu1 %vm1281_vm5, %v2457_v12 }
 0x19b   : > { %2701 = vmatmul.mubr.msk.bf16.gmra.mrb[0].mxu1 %vm1209_vm2, %v3531_v39 }
 0x19c   : > { %2706 = vmatprep.mubr.msk.bf16.mxu1 %vm1209_vm2, %v1438_v17 }
 0x1a3   : > { %2707 = vmatmul.mubr.msk.bf16.vlgmr.msra.gmra.mrb[4].mxu1 %vm1209_vm2, %v3536_v8 }
 0x1a4   : > { %2715 = vmatpush3.bf16.msra.mxu1 %v1559_v9  ;;  %2710 = vmatprep.mubr.msk.bf16.mxu1 %vm1209_vm2, %v3539_v14 }
 0x1a5   : > { %2952 = vmatprep.subr.msk.bf16.mxu1 %vm1281_vm5, %v2462_v16 }
 0x1ab   : > { %2711 = vmatmul.mubr.msk.bf16.gmra.mrb[0].mxu1 %vm1209_vm2, %v3549_v20 }
 0x1ac   : > { %2716 = vmatprep.mubr.msk.bf16.mxu1 %vm1209_vm2, %v1540_v21 }
 0x1b3   : > { %2717 = vmatmul.mubr.msk.bf16.vlgmr.msra.gmra.mrb[4].mxu1 %vm1209_vm2, %v1541_v22 }
 0x1b4   : > { %2725 = vmatpush3.bf16.msra.mxu1 %v1661_v23  ;;  %2720 = vmatprep.mubr.msk.bf16.mxu1 %vm1209_vm2, %v1542_v24 }
 0x1b5   : > { %2953 = vmatprep.subr.msk.bf16.mxu1 %vm1281_vm5, %v2467_v25 }
 0x1bb   : > { %2721 = vmatmul.mubr.msk.bf16.gmra.mrb[0].mxu1 %vm1209_vm2, %v1543_v28 }
 0x1bc   : > { %2726 = vmatprep.mubr.msk.bf16.mxu1 %vm1209_vm2, %v1642_v29 }
 0x1c3   : > { %2727 = vmatmul.mubr.msk.bf16.vlgmr.msra.gmra.mrb[4].mxu1 %vm1209_vm2, %v1643_v30 }
 0x1c4   : > { %2735 = vmatpush3.bf16.msra.mxu1 %v1763_v31  ;;  %2730 = vmatprep.mubr.msk.bf16.mxu1 %vm1209_vm2, %v1644_v32 }
 0x1c5   : > { %2954 = vmatprep.subr.msk.bf16.mxu1 %vm1281_vm5, %v2472_v33 }
 0x1cb   : > { %2731 = vmatmul.mubr.msk.bf16.gmra.mrb[0].mxu1 %vm1209_vm2, %v1645_v35 }
 0x1cc   : > { %2736 = vmatprep.mubr.msk.bf16.mxu1 %vm1209_vm2, %v1744_v36 }
 0x1d3   : > { %2737 = vmatmul.mubr.msk.bf16.vlgmr.msra.gmra.mrb[4].mxu1 %vm1209_vm2, %v1745_v38 }
 0x1d4   : > { %2745 = vmatpush3.bf16.msra.mxu1 %v1866_v40  ;;  %2740 = vmatprep.mubr.msk.bf16.mxu1 %vm1209_vm2, %v1746_v41 }
 0x1d5   : > { %2955 = vmatprep.subr.msk.bf16.mxu1 %vm1281_vm5, %v2477_v43 }
 0x1db   : > { %2741 = vmatmul.mubr.msk.bf16.gmra.mrb[0].mxu1 %vm1209_vm2, %v1747_v45 }
 0x1dc   : > { %2746 = vmatprep.mubr.msk.bf16.mxu1 %vm1209_vm2, %v3518_v2 }
 0x1e3   : > { %2747 = vmatmul.mubr.msk.bf16.vlgmr.msra.gmra.mrb[4].mxu1 %vm1209_vm2, %v3521_v11 }
 0x1e4   : > { %2755 = vmatpush3.bf16.msra.mxu1 %v1968_v47  ;;  %2750 = vmatprep.mubr.msk.bf16.mxu1 %vm1209_vm2, %v3531_v39 }
 0x1e5   : > { %2956 = vmatprep.subr.msk.bf16.mxu1 %vm1281_vm5, %v2482_v48 }
 0x1eb   : > { %2751 = vmatmul.mubr.msk.bf16.gmra.mrb[0].mxu1 %vm1209_vm2, %v1850_v50 }
 0x1ec   : > { %2756 = vmatprep.mubr.msk.bf16.mxu1 %vm1209_vm2, %v3488_v49  ;;  %v2169_v49 = vsel %vm319_vm0, %v2160_v55, 0 }
 0x1f3   : > { %2757 = vmatmul.mubr.msk.bf16.vlgmr.msra.gmra.mrb[4].mxu1 %vm1209_vm2, %v3498_v51  ;;  %v2050_v51 = vld [vmem:[#allocation2 + $0x92] sm:$0xff] }
 0x1f4   : > { %2765 = vmatpush3.bf16.msra.mxu1 %v2070_v52  ;;  %2760 = vmatprep.mubr.msk.bf16.mxu1 %vm1209_vm2, %v3508_v58  ;;  %v2054_v58 = vpack.c.bf16 %v2050_v51, %v1743_v44 }
 0x1f5   : > { %2957 = vmatprep.subr.msk.bf16.mxu1 %vm319_vm0, %v2160_v55 }
 0x1fb   : > { %2761 = vmatmul.mubr.msk.bf16.gmra.mrb[0].mxu1 %vm1209_vm2, %v1952_v57 }
 0x1fc   : > { %2766 = vmatprep.mubr.msk.bf16.mxu1 %vm1209_vm2, %v3536_v8 }
 0x203   : > { %2767 = vmatmul.mubr.msk.bf16.vlgmr.msra.gmra.mrb[4].mxu1 %vm1209_vm2, %v3539_v14 }
 0x204   : > { %2775 = vmatpush3.bf16.msra.mxu1 %v2169_v49  ;;  %2770 = vmatprep.mubr.msk.bf16.mxu1 %vm1209_vm2, %v3549_v20 }
 0x20b   : > { %2771 = vmatmul.mubr.msk.bf16.gmra.mrb[0].mxu1 %vm1209_vm2, %v2054_v58 }
 0x20c   : > { %2776 = vmatprep.mubr.msk.bf16.mxu1 %vm306_vm1, %v3338_v42 }
 0x213   : > { %2777 = vmatmul.mubr.msk.bf16.vlgmr.msra.gmra.mrb[4].mxu1 %vm306_vm1, %v3347_v53  ;;  %v2488_v53 = vld [vmem:[%s3701_s6] ss:$0 sm:$0xff] }
 0x214   : > { %2780 = vmatprep.mubr.msk.bf16.mxu1 %vm306_vm1, %v3349_v54  ;;  %v2800_v8 = vadd.f32 %v2488_v53, %v2487_v0 }
 0x21b   : > { %2781 = vmatmul.mubr.msk.bf16.gmra.mrb[0].mxu1 %vm306_vm1, %v3364_v61 }
 0x256   : > { %v2688_v59 = vpop.f32.mrb[8].mxu0 }
 0x257   : > { %v1319_v60 = vpop.f32.mrb[9].mxu0  ;;  %v2786_v2 = vadd.f32 %v2688_v59, %v2487_v0 }
 0x258   : > { %v2689_v62 = vpop.f32.mrb[10].mxu0  ;;  %v2789_v54 = vadd.f32 %v2487_v0, %v1319_v60 }
 0x259   : > { %v1322_v63 = vpop.f32.mrb[11].mxu0  ;;  %v2792_v1 = vadd.f32 %v2689_v62, %v2487_v0 }
 0x25a   : > { %v2795_v42 = vadd.f32 %v2487_v0, %v1322_v63 }
 0x25b   : > { %v2793_v11 = vadd.f32 %v2792_v1, %v2488_v53 }
 0x25c   : > { %v2796_v15 = vadd.f32 %v2795_v42, %v2488_v53 }
 0x2e6   : > { %v2778_v3 = vpop.f32.mrb[4].mxu1 }
 0x2e7   : > { %v2787_v61 = vadd.f32 %v2786_v2, %v2778_v3  ;;  %v2205_v6 = vpop.f32.mrb[5].mxu1 }
 0x2e8   : > { %v2790_v12 = vadd.f32 %v2789_v54, %v2205_v6  ;;  %v2779_v13 = vpop.f32.mrb[6].mxu1 }
 0x2e9   : > { %v2788_v26 = vadd.f32 %v2787_v61, %v2488_v53  ;;  %v2794_v37 = vadd.f32 %v2793_v11, %v2779_v13  ;;  %v2208_v39 = vpop.f32.mrb[7].mxu1 }
 0x2ea   : > { %v2791_v17 = vadd.f32 %v2790_v12, %v2488_v53  ;;  %v2797_v4 = vadd.f32 %v2796_v15, %v2208_v39 }
 0x2eb   : > { %v2246_v5 = vmax.f32 %v2788_v26, 0.0  ;;  %v2247_v7 = vmax.f32 %v2794_v37, 0.0 }
 0x2ec   : > { %v2244_v9 = vmax.f32 %v2791_v17, 0.0  ;;  %v2245_v10 = vmax.f32 %v2797_v4, 0.0 }
 0x2ed   : > { %2254 = vst.msk [vmem:[%s271_s21 + $0x10] sm:$0xff] %vm1209_vm2, %v2246_v5  ;;  %2255 = vst.msk [vmem:[%s271_s21 + $0x18] sm:$0xff] %vm1209_vm2, %v2247_v7 }
 0x2ee   : > { %2252 = vst.msk [vmem:[%s271_s21] sm:$0xff] %vm1209_vm2, %v2244_v9  ;;  %2253 = vst.msk [vmem:[%s271_s21 + $0x8] sm:$0xff] %vm1209_vm2, %v2245_v10  ;;  %v2782_v14 = vpop.f32.mrb[0].mxu1 }
 0x2ef   : > { %v2799_v16 = vadd.f32 %v2800_v8, %v2782_v14  ;;  %v2221_v18 = vpop.f32.mrb[1].mxu1 }
 0x2f0   : > { %v2801_v19 = vadd.f32 %v2800_v8, %v2221_v18  ;;  %v2783_v20 = vpop.f32.mrb[2].mxu1 }
 0x2f1   : > { %v2250_v21 = vmax.f32 %v2799_v16, 0.0  ;;  %v2803_v22 = vadd.f32 %v2800_v8, %v2783_v20  ;;  %v2224_v23 = vpop.f32.mrb[3].mxu1 }
 0x2f2   : > { %v2248_v24 = vmax.f32 %v2801_v19, 0.0  ;;  %v2805_v25 = vadd.f32 %v2800_v8, %v2224_v23 }
 0x2f3   : > { %2258 = vst.msk [vmem:[%s271_s21 + $0x30] sm:$0xff] %vm1209_vm2, %v2250_v21  ;;  %v2251_v27 = vmax.f32 %v2803_v22, 0.0 }
 0x2f4   : > { %2256 = vst.msk [vmem:[%s271_s21 + $0x20] sm:$0xff] %vm1209_vm2, %v2248_v24  ;;  %v2249_v28 = vmax.f32 %v2805_v25, 0.0 }
 0x2f5   : > { %2259 = vst.msk [vmem:[%s271_s21 + $0x38] sm:$0xff] %vm1209_vm2, %v2251_v27 }
 0x2f6   : > { %2257 = vst.msk [vmem:[%s271_s21 + $0x28] sm:$0xff] %vm1209_vm2, %v2249_v28 }
 0x2f7   : > { %3014 = shalt.err (!%p3011_p3)
}
 0x2f8   : > { %s3015_s18 = scalar_lea.hbm %s3645_s13, 1024  ;;  %s3019_s22 = scalar_lea.hbm %s3702_s7, 2048 }
 0x2f9   : > { %p3016_p4 = scmp.ne.s32.totalorder %s3645_s13, %s3015_s18  ;;  %p3020_p9 = scmp.lt.u32.totalorder %s3645_s13, %s3702_s7 }
 0x2fa   : > { %p3021_p10 = scmp.lt.u32.totalorder %s3019_s22, %s3015_s18  ;;  %p3023_p12 = scmp.lt.u32.totalorder %s3015_s18, %s3645_s13 }
 0x2fb   : > { %p3017_p7 = pnand %p3016_p4, %p3147_p5 }
 0x2fc   : > { %p3022_p11 = por %p3021_p10, %p3020_p9 }
 0x2fd   : > { %p3018_p8 = pneg %p3017_p7 }
 0x2fe   : > { %p3024_p13 = por %p3023_p12, %p3022_p11 }
 0x300   : > { %p3025_p0 = pnand %p3024_p13, %p3018_p8 }
 0x302   : > { %3028 = shalt.err (!%p3025_p0)
}
 0x303   : > { %s3067_s8 = smov 128   ;;  %s3068_s9 = smov 8  }
 0x304   : > { %2959 = dma.vmem_to_hbm [thread:$0]  (%p3147_p5), %s3647_s29, 1024, %s3645_s13, %s3654_s28, %s3067_s8, %s3067_s8, %s3068_s9  }
 0x305 PF: > { %p2965_p1 = scmp.ge.s32.totalorder %s3063_s27, 2  ;;  %s2289_s14 = sand.u32 1, %s3051_s24  }
 0x306   : > { %s2290_s15 = scalar_lea.sflag [#allocation4], %s2289_s14 }
 0x307   : > { %p2962_p2 = pnand %p2965_p1, %p3151_p6 }
 0x309   : > { %3046 = dma.done.wait (!%p2962_p2), %s2290_s15, 1024  }
 0x30a   : > { %3048 = vsyncadd (!%p2962_p2), %s2290_s15, 4294966272  ;;  %p17_p3 = scmp.ge.s32.totalorder %s3134_s30, 4   ;;  %s3705_s24 = smov %s3055_s25 }
 0x30b   : > { %s3706_s25 = smov %s3059_s26  ;;  %s3707_s26 = smov %s3145_s10 }
 0x30c   : > { %s3708_s27 = smov %s3134_s30  ;;  %19 = sbr.rel (!%p17_p3) target bundleno = 3 (0x3), region = 107 }
 0x313   :  { %2295 = vsyncpa [#allocation4], 1 }
 0x314   :  { %2297 = vsyncpa [#allocation4 + $0x1], 1 }

</bundles_post_ra>
